<compile_context>
chip_gen: v7x
topology: tpu7x:2x2x1
jax: 0.10.0
libtpu: 0.0.40
codegen_flags: <defaults>
</compile_context>

<pallas_src>
import functools
import math

import jax
import jax.numpy as jnp
import numpy as np
from jax import lax
from jax.experimental import pallas as pl
from jax.experimental.pallas import tpu as pltpu


def _round_up(x, m):
    return (x + m - 1) // m * m


def _pick_tile(batch):
    # samples per grid step: amortize per-step overhead while keeping the
    # (8, 128) block constraint satisfied (TB multiple of 8, or TB == batch).
    for tb in (16, 8):
        if batch % tb == 0:
            return tb
    return batch


def _nce_kernel(idx_ref, y_ref,              # scalar prefetch (SMEM): (B*(K+1),), (B,)
                cat_mem_ref,                 # (N, 4D) concatenated banks, HBM (ANY)
                feats_ref,                   # (4*TB, D) stacked features for this tile
                featc_ref,                   # (TB, 4D) lane-concat features for this tile
                packed_ref,                  # (TB, 6*KP) packed logits output tile
                cat_out_ref,                 # (N, 4D) aliased bank output, HBM (ANY)
                gbuf_ref, gsem, upd_ref, wsem,   # scratch
                *, T, momentum, use_softmax,
                batch, tile, kp1, kpad, dim, num_tiles):
    t = pl.program_id(0)
    TBK = tile * kp1                         # gathered rows per tile
    slot = t % 2

    # ---- gather: one (1, 4D) row DMA per (sample, k) of the tile ------------
    def issue(tile_idx, dst_slot):
        dbase = dst_slot * TBK

        @pl.loop(0, TBK)
        def _(i):
            row = idx_ref[tile_idx * TBK + i]
            pltpu.make_async_copy(
                cat_mem_ref.at[pl.ds(row, 1), :],
                gbuf_ref.at[pl.ds(dbase + i, 1), :],
                gsem.at[dst_slot]).start()

    # prime the pipeline on the first step
    @pl.when(t == 0)
    def _():
        issue(0, 0)

    # prefetch the NEXT tile before waiting on this tile's slot
    @pl.when(t + 1 < num_tiles)
    def _():
        issue(t + 1, 1 - slot)

    # single aggregated wait: all TBK row copies of this slot signal gsem[slot]
    # and land in a contiguous TBK-row region, so one wait sized to exactly
    # that region matches the issued byte count.
    sbase = slot * TBK
    if TBK % 8 == 0:
        sbase = pl.multiple_of(sbase, 8)
    wait_region = gbuf_ref.at[pl.ds(sbase, TBK), :]
    pltpu.make_async_copy(wait_region, wait_region, gsem.at[slot]).wait()

    inv_T = 1.0 / T
    for tt in range(tile):
        roff = slot * TBK + tt * kp1
        if kp1 % 8 == 0:
            roff = pl.multiple_of(roff, 8)
        Wt = gbuf_ref[pl.ds(roff, kp1), :]            # (K+1, 4D) gathered rows
        Ft = feats_ref[pl.ds(4 * tt, 4), :]           # (4, D): rows l, ab, ori, comp

        # per-bank scores: S[j][f, k] = feat_f . bank_j[idx[b, k]]
        S = []
        for j in range(4):
            Wj = Wt[:, j * dim:(j + 1) * dim]         # (K+1, D)
            S.append(lax.dot_general(
                Ft, Wj, (((1,), (1,)), ((), ())),
                preferred_element_type=jnp.float32))  # (4, K+1)

        # output segment order: [l_ori, ab_l, ori_ab, ab_comp, l_comp, comp_ori]
        segs = (S[2][0:1], S[0][1:2], S[1][2:3],
                S[3][1:2], S[3][0:1], S[2][3:4])
        for s, seg in enumerate(segs):
            v = seg * inv_T
            if not use_softmax:
                v = jnp.exp(v)
            # each segment goes to its own 128-aligned lane range
            packed_ref[pl.ds(tt, 1), pl.ds(s * kpad, kp1)] = v

        # ---- momentum update of the positive rows (idx[:, 0] == y, as set by
        #      the module's own sampling) -----------------------------------
        b = t * tile + tt
        fc = featc_ref[pl.ds(tt, 1), :]               # (1, 4D) [l|ab|ori|comp]
        pos = Wt[0:1, :]                              # (1, 4D) positive rows
        upd = pos * momentum + fc * (1.0 - momentum)
        for j in range(4):
            ch = upd[:, j * dim:(j + 1) * dim]        # (1, D) bank-j chunk
            # NOTE: no epsilon in the L2 norm, faithful to the PyTorch module.
            inv = lax.rsqrt(jnp.sum(ch * ch, axis=1, keepdims=True))
            upd_ref[pl.ds(b, 1), pl.ds(j * dim, dim)] = ch * inv

    # ---- deferred write-back on the last step (so every gather above saw the
    #      old memory, like index_copy_ at the end of the PyTorch forward).
    #      All B row DMAs are started back-to-back and completed with one
    #      aggregated wait.  Duplicate y -> last-writer-wins, like torch. ------
    @pl.when(t == num_tiles - 1)
    def _():
        @pl.loop(0, batch)
        def _(bb):
            row = y_ref[bb]
            pltpu.make_async_copy(
                upd_ref.at[pl.ds(bb, 1), :],
                cat_out_ref.at[pl.ds(row, 1), :],
                wsem.at[0]).start()

        wb_region = upd_ref.at[pl.ds(0, batch), :]
        pltpu.make_async_copy(wb_region, wb_region, wsem.at[0]).wait()


def nce_average_forward(l, ab, ori, comp, y, idx, memories,
                        *, T=0.07, momentum=0.5, use_softmax=False, Zs=None):
    """Functional NCEAverage.forward.

    Returns (outs, new_memories, Zs):
      outs = (out_l_ori, out_ab_l, out_ori_ab, out_ab_comp, out_l_comp,
              out_comp_ori), each (B, K+1, 1) float32.
      new_memories = momentum-updated (memory_l, memory_ab, memory_ori,
                     memory_comp) (rows y replaced, everything else unchanged).
      Zs = (Z_l, Z_ab, Z_ori, Z_comp); pass them back in on subsequent calls
      to reproduce the module's Z caching (first call computes them).
    """
    mem_l, mem_ab, mem_ori, mem_comp = memories
    B, D = l.shape
    N = mem_l.shape[0]
    kp1 = idx.shape[1]
    KP = _round_up(kp1, 128)          # lane-aligned stride per segment
    P = 6 * KP

    TB = _pick_tile(B)
    nt = B // TB

    idx_flat = idx.reshape(-1).astype(jnp.int32)      # (B*(K+1),) in SMEM
    y32 = y.reshape(B).astype(jnp.int32)

    l32, ab32, ori32, comp32 = (x.astype(jnp.float32) for x in (l, ab, ori, comp))
    cat_mem = jnp.concatenate(
        [m.astype(jnp.float32) for m in (mem_l, mem_ab, mem_ori, mem_comp)],
        axis=1)                                                    # (N, 4D)
    feats4 = jnp.stack([l32, ab32, ori32, comp32], axis=1).reshape(4 * B, D)
    featc = jnp.concatenate([l32, ab32, ori32, comp32], axis=1)    # (B, 4D)

    kernel = functools.partial(
        _nce_kernel, T=float(T), momentum=float(momentum),
        use_softmax=bool(use_softmax), batch=B, tile=TB, kp1=kp1,
        kpad=KP, dim=D, num_tiles=nt)

    vmem_need = 4 * (2 * TB * kp1 * 4 * D                 # gather double buffer
                     + B * 4 * D                          # updated rows
                     + 2 * (4 * TB * D + TB * 4 * D + TB * P))   # pipelined blocks
    vmem_limit = int(min(100 * 1024 * 1024,
                         max(32 * 1024 * 1024, 2 * vmem_need)))

    grid_spec = pltpu.PrefetchScalarGridSpec(
        num_scalar_prefetch=2,                # idx_flat, y live in SMEM
        grid=(nt,),
        in_specs=[
            pl.BlockSpec(memory_space=pl.ANY),                               # cat bank, HBM
            pl.BlockSpec((4 * TB, D), lambda t, idx_ref, y_ref: (t, 0)),     # stacked feats
            pl.BlockSpec((TB, 4 * D), lambda t, idx_ref, y_ref: (t, 0)),     # concat feats
        ],
        out_specs=[
            pl.BlockSpec((TB, P), lambda t, idx_ref, y_ref: (t, 0)),         # packed logits
            pl.BlockSpec(memory_space=pl.ANY),                               # aliased bank
        ],
        scratch_shapes=[
            pltpu.VMEM((2 * TB * kp1, 4 * D), jnp.float32),  # double-buffered gather
            pltpu.SemaphoreType.DMA((2,)),                   # one gather sem per slot
            pltpu.VMEM((B, 4 * D), jnp.float32),             # lane-dense updated rows
            pltpu.SemaphoreType.DMA((1,)),                   # write-back sem
        ],
    )

    out_shape = (
        jax.ShapeDtypeStruct((B, P), jnp.float32),
        jax.ShapeDtypeStruct((N, 4 * D), jnp.float32),
    )

    packed, cat_new = pl.pallas_call(
        kernel,
        out_shape=out_shape,
        grid_spec=grid_spec,
        # cat bank is call operand 2 (after the 2 scalar-prefetch args) and
        # aliases output 1: only the B updated rows are DMA'd back in-kernel.
        input_output_aliases={2: 1},
        compiler_params=pltpu.CompilerParams(
            dimension_semantics=("arbitrary",),   # sequential: cross-step DMA state
            vmem_limit_bytes=vmem_limit),
    )(idx_flat, y32, cat_mem, feats4, featc)

    segs = [packed[:, s * KP: s * KP + kp1] for s in range(6)]
    e_l_ori, e_ab_l, e_ori_ab, e_ab_comp, e_l_comp, e_comp_ori = segs
    new_mems = tuple(cat_new[:, j * D:(j + 1) * D] for j in range(4))

    if use_softmax:
        outs = (e_l_ori, e_ab_l, e_ori_ab, e_ab_comp, e_l_comp, e_comp_ori)
        zs = (jnp.float32(-1.0),) * 4
    else:
        if Zs is None:
            # first-call behaviour: Z_* = mean(exp(out_*/T)) * outputSize
            Z_l = jnp.mean(e_l_ori) * N
            Z_ab = jnp.mean(e_ab_l) * N
            Z_ori = jnp.mean(e_ori_ab) * N
            Z_comp = jnp.mean(e_comp_ori) * N
        else:
            Z_l, Z_ab, Z_ori, Z_comp = Zs
        outs = (e_l_ori / Z_l, e_ab_l / Z_ab, e_ori_ab / Z_ori,
                e_ab_comp / Z_ab, e_l_comp / Z_l, e_comp_ori / Z_comp)
        zs = (Z_l, Z_ab, Z_ori, Z_comp)

    outs = tuple(o.reshape(B, kp1, 1) for o in outs)
    return outs, new_mems, zs


def _reference(l, ab, ori, comp, y, idx, memories, *, T, momentum, use_softmax):
    """Pure-JAX mirror of NCEAverage.forward (first call, Z_* = -1)."""
    mem_l, mem_ab, mem_ori, mem_comp = memories
    N = mem_l.shape[0]
    w_l, w_ab, w_ori, w_comp = (m[idx] for m in memories)      # (B, K+1, D)

    def dot(w, f):
        return jnp.einsum('bkd,bd->bk', w, f, precision='highest')

    out_ab_l = dot(w_l, ab)
    out_l_ori = dot(w_ori, l)
    out_ori_ab = dot(w_ab, ori)
    out_ab_comp = dot(w_comp, ab)
    out_l_comp = dot(w_comp, l)
    out_comp_ori = dot(w_ori, comp)

    if use_softmax:
        outs = tuple((o / T)[..., None] for o in
                     (out_l_ori, out_ab_l, out_ori_ab, out_ab_comp,
                      out_l_comp, out_comp_ori))
    else:
        e_ab_l = jnp.exp(out_ab_l / T)
        e_l_ori = jnp.exp(out_l_ori / T)
        e_ori_ab = jnp.exp(out_ori_ab / T)
        e_ab_comp = jnp.exp(out_ab_comp / T)
        e_l_comp = jnp.exp(out_l_comp / T)
        e_comp_ori = jnp.exp(out_comp_ori / T)
        Z_l = jnp.mean(e_l_ori) * N
        Z_ab = jnp.mean(e_ab_l) * N
        Z_ori = jnp.mean(e_ori_ab) * N
        Z_comp = jnp.mean(e_comp_ori) * N
        outs = tuple(o[..., None] for o in
                     (e_l_ori / Z_l, e_ab_l / Z_ab, e_ori_ab / Z_ori,
                      e_ab_comp / Z_ab, e_l_comp / Z_l, e_comp_ori / Z_comp))

    def upd(mem, feat):
        pos = mem[y] * momentum + feat * (1.0 - momentum)
        return pos / jnp.linalg.norm(pos, axis=1, keepdims=True)

    new = tuple(m.at[y].set(upd(m, f))
                for m, f in zip(memories, (l, ab, ori, comp)))
    return outs, new


if __name__ == "__main__":
    # small, deterministic setup consistent with NCEAverage.__init__
    B, D, N, K = 4, 32, 64, 7          # batch, inputSize, outputSize (nLem), negatives
    T, momentum = 0.07, 0.5

    key = jax.random.PRNGKey(0)
    ks = jax.random.split(key, 10)

    stdv = 1.0 / math.sqrt(D / 3)
    mem_l = jax.random.uniform(ks[0], (N, D), jnp.float32, -stdv, stdv)
    mem_ab = jax.random.uniform(ks[1], (N, D), jnp.float32, -stdv, stdv)
    mem_ori = jax.random.uniform(ks[2], (N, D), jnp.float32, -stdv, stdv)
    mem_comp = jax.random.uniform(ks[3], (N, D), jnp.float32, -stdv, stdv)
    memories = (mem_l, mem_ab, mem_ori, mem_comp)

    def feat(k):
        v = jax.random.normal(k, (B, D), jnp.float32)
        return v / jnp.linalg.norm(v, axis=1, keepdims=True)

    l, ab, ori, comp = feat(ks[4]), feat(ks[5]), feat(ks[6]), feat(ks[7])

    # TODO(synk): AliasMethod multinomial draw is host-side RNG; with uniform
    # unigrams it is plain uniform sampling, emulated here.  Positives are
    # copied into column 0 (idx.select(1, 0).copy_(y)) as in the module.
    y = jax.random.permutation(ks[8], N)[:B].astype(jnp.int32)
    idx = jax.random.randint(ks[9], (B, K + 1), 0, N, jnp.int32)
    idx = idx.at[:, 0].set(y)

    # pure-JAX reference (the concatenated bank passed to the kernel is a
    # temporary, so the original memories are untouched).
    ref_outs, ref_mems = _reference(l, ab, ori, comp, y, idx, memories,
                                    T=T, momentum=momentum, use_softmax=False)
    ref_outs = jax.block_until_ready(ref_outs)
    ref_mems = jax.block_until_ready(ref_mems)

    outs, new_mems, zs = nce_average_forward(
        l, ab, ori, comp, y, idx, memories,
        T=T, momentum=momentum, use_softmax=False)
    outs = jax.block_until_ready(outs)
    new_mems = jax.block_until_ready(new_mems)
    zs = jax.block_until_ready(zs)

    ok = True
    for got, want in zip(outs, ref_outs):
        ok &= bool(np.allclose(np.asarray(got), np.asarray(want),
                               rtol=5e-2, atol=1e-3))
    for got, want in zip(new_mems, ref_mems):
        ok &= bool(np.allclose(np.asarray(got), np.asarray(want),
                               rtol=1e-3, atol=1e-5))
    if not ok:
        raise SystemExit("NCEAverage Pallas kernel does not match reference")
    print("KERNEL_OK")
</pallas_src>

<mosaic_0001>
module attributes {stable_mosaic.version = 11 : i64} {
  func.func @_nce_kernel(%arg0: i32, %arg1: memref<32xi32, #tpu.memory_space<smem>>, %arg2: memref<4xi32, #tpu.memory_space<smem>>, %arg3: memref<64x128xf32, #tpu.memory_space<any>>, %arg4: memref<16x32xf32, #tpu.memory_space<vmem>>, %arg5: memref<4x128xf32, #tpu.memory_space<vmem>>, %arg6: memref<4x768xf32, #tpu.memory_space<vmem>>, %arg7: memref<64x128xf32, #tpu.memory_space<any>>, %arg8: memref<64x128xf32, #tpu.memory_space<vmem>>, %arg9: memref<2x!tpu.dma_semaphore, #tpu.memory_space<semaphore_mem>>, %arg10: memref<4x128xf32, #tpu.memory_space<vmem>>, %arg11: memref<1x!tpu.dma_semaphore, #tpu.memory_space<semaphore_mem>>) attributes {dimension_semantics = [#tpu.dimension_semantics<arbitrary>], iteration_bounds = array<i64: 1>, scalar_prefetch = 2 : i64, scratch_operands = 4 : i64, tpu.core_type = #tpu.core_type<tc>, window_params = [{}, {transform_indices = @transform_1, window_bounds = array<i64: 16, 32>}, {transform_indices = @transform_2, window_bounds = array<i64: 4, 128>}, {transform_indices = @transform_3, window_bounds = array<i64: 4, 768>}, {}]} {
    %c2_i32 = arith.constant 2 : i32
    %c0_i32 = arith.constant 0 : i32
    %0 = arith.cmpi eq, %c2_i32, %c0_i32 : i32
    %c1_i32 = arith.constant 1 : i32
    %1 = arith.select %0, %c1_i32, %c2_i32 : i32
    %2 = arith.remsi %arg0, %1 : i32
    %c0_i32_0 = arith.constant 0 : i32
    %3 = arith.cmpi ne, %2, %c0_i32_0 : i32
    %c0_i32_1 = arith.constant 0 : i32
    %4 = arith.cmpi slt, %2, %c0_i32_1 : i32
    %c0_i32_2 = arith.constant 0 : i32
    %5 = arith.cmpi slt, %1, %c0_i32_2 : i32
    %6 = arith.xori %4, %5 : i1
    %7 = arith.andi %6, %3 : i1
    %8 = arith.addi %2, %1 : i32
    %9 = arith.select %7, %8, %2 : i32
    %c0_i32_3 = arith.constant 0 : i32
    %10 = arith.cmpi eq, %arg0, %c0_i32_3 : i32
    %11 = arith.extui %10 : i1 to i32
    %c0_i32_4 = arith.constant 0 : i32
    %12 = arith.cmpi ne, %11, %c0_i32_4 : i32
    scf.if %12 {
      %c0_i32_155 = arith.constant 0 : i32
      %c32_i32_156 = arith.constant 32 : i32
      %382 = arith.addi %c0_i32_155, %c32_i32_156 : i32
      %c1_i32_157 = arith.constant 1 : i32
      scf.for %arg12 = %c0_i32_155 to %382 step %c1_i32_157  : i32 {
        %c1_i32_159 = arith.constant 1 : i32
        %383 = arith.muli %arg12, %c1_i32_159 : i32
        %c0_i32_160 = arith.constant 0 : i32
        %384 = arith.addi %c0_i32_160, %383 : i32
        %c0_i32_161 = arith.constant 0 : i32
        %385 = arith.addi %c0_i32_161, %384 : i32
        %386 = arith.index_cast %385 : i32 to index
        %387 = memref.load %arg1[%386] : memref<32xi32, #tpu.memory_space<smem>>
        %c0_i32_162 = arith.constant 0 : i32
        %388 = arith.addi %c0_i32_162, %384 : i32
        %c0_i32_163 = arith.constant 0 : i32
        %c0_i32_164 = arith.constant 0 : i32
        %389 = tpu.memref_slice %arg3[%387, %c0_i32_164] : memref<64x128xf32, #tpu.memory_space<any>> -> memref<1x128xf32, #tpu.memory_space<any>>
        %c0_i32_165 = arith.constant 0 : i32
        %390 = tpu.memref_slice %arg8[%388, %c0_i32_165] : memref<64x128xf32, #tpu.memory_space<vmem>> -> memref<1x128xf32, #tpu.memory_space<vmem>>
        %391 = tpu.memref_slice %arg9[%c0_i32_163] : memref<2x!tpu.dma_semaphore, #tpu.memory_space<semaphore_mem>> -> memref<1x!tpu.dma_semaphore, #tpu.memory_space<semaphore_mem>>
        %392 = tpu.memref_squeeze %391 : memref<1x!tpu.dma_semaphore, #tpu.memory_space<semaphore_mem>> -> memref<!tpu.dma_semaphore, #tpu.memory_space<semaphore_mem>>
        tpu.enqueue_dma source(%389 : memref<1x128xf32, #tpu.memory_space<any>>) target(%390 : memref<1x128xf32, #tpu.memory_space<vmem>>) target_semaphore(%392 : memref<!tpu.dma_semaphore, #tpu.memory_space<semaphore_mem>>)
      }
      %c32_i32_158 = arith.constant 32 : i32
    } else {
    }
    %c1_i32_5 = arith.constant 1 : i32
    %13 = arith.addi %arg0, %c1_i32_5 : i32
    %c1_i32_6 = arith.constant 1 : i32
    %14 = arith.cmpi slt, %13, %c1_i32_6 : i32
    %15 = arith.extui %14 : i1 to i32
    %c0_i32_7 = arith.constant 0 : i32
    %16 = arith.cmpi ne, %15, %c0_i32_7 : i32
    scf.if %16 {
      %c1_i32_155 = arith.constant 1 : i32
      %382 = arith.addi %arg0, %c1_i32_155 : i32
      %c1_i32_156 = arith.constant 1 : i32
      %383 = arith.subi %c1_i32_156, %9 : i32
      %c32_i32_157 = arith.constant 32 : i32
      %384 = arith.muli %383, %c32_i32_157 : i32
      %c0_i32_158 = arith.constant 0 : i32
      %c32_i32_159 = arith.constant 32 : i32
      %385 = arith.addi %c0_i32_158, %c32_i32_159 : i32
      %c1_i32_160 = arith.constant 1 : i32
      scf.for %arg12 = %c0_i32_158 to %385 step %c1_i32_160  : i32 {
        %c1_i32_162 = arith.constant 1 : i32
        %386 = arith.muli %arg12, %c1_i32_162 : i32
        %c0_i32_163 = arith.constant 0 : i32
        %387 = arith.addi %c0_i32_163, %386 : i32
        %c32_i32_164 = arith.constant 32 : i32
        %388 = arith.muli %382, %c32_i32_164 : i32
        %389 = arith.addi %388, %387 : i32
        %390 = arith.index_cast %389 : i32 to index
        %391 = memref.load %arg1[%390] : memref<32xi32, #tpu.memory_space<smem>>
        %392 = arith.addi %384, %387 : i32
        %c0_i32_165 = arith.constant 0 : i32
        %393 = tpu.memref_slice %arg3[%391, %c0_i32_165] : memref<64x128xf32, #tpu.memory_space<any>> -> memref<1x128xf32, #tpu.memory_space<any>>
        %c0_i32_166 = arith.constant 0 : i32
        %394 = tpu.memref_slice %arg8[%392, %c0_i32_166] : memref<64x128xf32, #tpu.memory_space<vmem>> -> memref<1x128xf32, #tpu.memory_space<vmem>>
        %395 = tpu.memref_slice %arg9[%383] : memref<2x!tpu.dma_semaphore, #tpu.memory_space<semaphore_mem>> -> memref<1x!tpu.dma_semaphore, #tpu.memory_space<semaphore_mem>>
        %396 = tpu.memref_squeeze %395 : memref<1x!tpu.dma_semaphore, #tpu.memory_space<semaphore_mem>> -> memref<!tpu.dma_semaphore, #tpu.memory_space<semaphore_mem>>
        tpu.enqueue_dma source(%393 : memref<1x128xf32, #tpu.memory_space<any>>) target(%394 : memref<1x128xf32, #tpu.memory_space<vmem>>) target_semaphore(%396 : memref<!tpu.dma_semaphore, #tpu.memory_space<semaphore_mem>>)
      }
      %c32_i32_161 = arith.constant 32 : i32
    } else {
    }
    %c32_i32 = arith.constant 32 : i32
    %17 = arith.muli %9, %c32_i32 : i32
    %18 = tpu.assume_multiple %17, 8 : i32
    %c0_i32_8 = arith.constant 0 : i32
    %19 = tpu.memref_slice %arg8[%18, %c0_i32_8] : memref<64x128xf32, #tpu.memory_space<vmem>> -> memref<32x128xf32, #tpu.memory_space<vmem>>
    %c0_i32_9 = arith.constant 0 : i32
    %20 = tpu.memref_slice %arg8[%18, %c0_i32_9] : memref<64x128xf32, #tpu.memory_space<vmem>> -> memref<32x128xf32, #tpu.memory_space<vmem>>
    %21 = tpu.memref_slice %arg9[%9] : memref<2x!tpu.dma_semaphore, #tpu.memory_space<semaphore_mem>> -> memref<1x!tpu.dma_semaphore, #tpu.memory_space<semaphore_mem>>
    %22 = tpu.memref_squeeze %21 : memref<1x!tpu.dma_semaphore, #tpu.memory_space<semaphore_mem>> -> memref<!tpu.dma_semaphore, #tpu.memory_space<semaphore_mem>>
    tpu.wait_dma2 semaphore(%22 : memref<!tpu.dma_semaphore, #tpu.memory_space<semaphore_mem>>) src(%19 : memref<32x128xf32, #tpu.memory_space<vmem>>) dst(%20 : memref<32x128xf32, #tpu.memory_space<vmem>>)
    %c32_i32_10 = arith.constant 32 : i32
    %23 = arith.muli %9, %c32_i32_10 : i32
    %c0_i32_11 = arith.constant 0 : i32
    %24 = arith.addi %23, %c0_i32_11 : i32
    %25 = tpu.assume_multiple %24, 8 : i32
    %26 = arith.index_cast %25 : i32 to index
    %c0 = arith.constant 0 : index
    %27 = vector.load %arg8[%26, %c0] : memref<64x128xf32, #tpu.memory_space<vmem>>, vector<8x128xf32>
    %c0_12 = arith.constant 0 : index
    %c0_13 = arith.constant 0 : index
    %28 = vector.load %arg4[%c0_12, %c0_13] : memref<16x32xf32, #tpu.memory_space<vmem>>, vector<4x32xf32>
    %29 = vector.extract_strided_slice %27 {offsets = [0, 0], sizes = [8, 32], strides = [1, 1]} : vector<8x128xf32> to vector<8x32xf32>
    %cst = arith.constant dense<0.000000e+00> : vector<4x8xf32>
    %30 = tpu.matmul %28, %29, %cst {dimension_numbers = #tpu.dot_dimension_numbers<[1], [1], [0], [0], [0, 0, 1, 0], [], []>} : vector<4x32xf32>, vector<8x32xf32>, vector<4x8xf32> -> vector<4x8xf32>
    %31 = vector.extract_strided_slice %27 {offsets = [0, 32], sizes = [8, 32], strides = [1, 1]} : vector<8x128xf32> to vector<8x32xf32>
    %cst_14 = arith.constant dense<0.000000e+00> : vector<4x8xf32>
    %32 = tpu.matmul %28, %31, %cst_14 {dimension_numbers = #tpu.dot_dimension_numbers<[1], [1], [0], [0], [0, 0, 1, 0], [], []>} : vector<4x32xf32>, vector<8x32xf32>, vector<4x8xf32> -> vector<4x8xf32>
    %33 = vector.extract_strided_slice %27 {offsets = [0, 64], sizes = [8, 32], strides = [1, 1]} : vector<8x128xf32> to vector<8x32xf32>
    %cst_15 = arith.constant dense<0.000000e+00> : vector<4x8xf32>
    %34 = tpu.matmul %28, %33, %cst_15 {dimension_numbers = #tpu.dot_dimension_numbers<[1], [1], [0], [0], [0, 0, 1, 0], [], []>} : vector<4x32xf32>, vector<8x32xf32>, vector<4x8xf32> -> vector<4x8xf32>
    %35 = vector.extract_strided_slice %27 {offsets = [0, 96], sizes = [8, 32], strides = [1, 1]} : vector<8x128xf32> to vector<8x32xf32>
    %cst_16 = arith.constant dense<0.000000e+00> : vector<4x8xf32>
    %36 = tpu.matmul %28, %35, %cst_16 {dimension_numbers = #tpu.dot_dimension_numbers<[1], [1], [0], [0], [0, 0, 1, 0], [], []>} : vector<4x32xf32>, vector<8x32xf32>, vector<4x8xf32> -> vector<4x8xf32>
    %37 = vector.extract_strided_slice %34 {offsets = [0, 0], sizes = [1, 8], strides = [1, 1]} : vector<4x8xf32> to vector<1x8xf32>
    %38 = vector.extract_strided_slice %30 {offsets = [1, 0], sizes = [1, 8], strides = [1, 1]} : vector<4x8xf32> to vector<1x8xf32>
    %39 = vector.extract_strided_slice %32 {offsets = [2, 0], sizes = [1, 8], strides = [1, 1]} : vector<4x8xf32> to vector<1x8xf32>
    %40 = vector.extract_strided_slice %36 {offsets = [1, 0], sizes = [1, 8], strides = [1, 1]} : vector<4x8xf32> to vector<1x8xf32>
    %41 = vector.extract_strided_slice %36 {offsets = [0, 0], sizes = [1, 8], strides = [1, 1]} : vector<4x8xf32> to vector<1x8xf32>
    %42 = vector.extract_strided_slice %34 {offsets = [3, 0], sizes = [1, 8], strides = [1, 1]} : vector<4x8xf32> to vector<1x8xf32>
    %cst_17 = arith.constant 14.2857141 : f32
    %43 = vector.broadcast %cst_17 : f32 to vector<1x8xf32>
    %44 = arith.mulf %37, %43 : vector<1x8xf32>
    %45 = math.exp %44 : vector<1x8xf32>
    %c0_18 = arith.constant 0 : index
    %c0_19 = arith.constant 0 : index
    %46 = vector.load %arg6[%c0_18, %c0_19] : memref<4x768xf32, #tpu.memory_space<vmem>>, vector<1x8xf32>
    tpu.vector_store %arg6[%c0_18, %c0_19], %45 {strides = array<i32>} : memref<4x768xf32, #tpu.memory_space<vmem>>, vector<1x8xf32>,
    %cst_20 = arith.constant 14.2857141 : f32
    %47 = vector.broadcast %cst_20 : f32 to vector<1x8xf32>
    %48 = arith.mulf %38, %47 : vector<1x8xf32>
    %49 = math.exp %48 : vector<1x8xf32>
    %c0_21 = arith.constant 0 : index
    %c128 = arith.constant 128 : index
    %50 = vector.load %arg6[%c0_21, %c128] : memref<4x768xf32, #tpu.memory_space<vmem>>, vector<1x8xf32>
    tpu.vector_store %arg6[%c0_21, %c128], %49 {strides = array<i32>} : memref<4x768xf32, #tpu.memory_space<vmem>>, vector<1x8xf32>,
    %cst_22 = arith.constant 14.2857141 : f32
    %51 = vector.broadcast %cst_22 : f32 to vector<1x8xf32>
    %52 = arith.mulf %39, %51 : vector<1x8xf32>
    %53 = math.exp %52 : vector<1x8xf32>
    %c0_23 = arith.constant 0 : index
    %c256 = arith.constant 256 : index
    %54 = vector.load %arg6[%c0_23, %c256] : memref<4x768xf32, #tpu.memory_space<vmem>>, vector<1x8xf32>
    tpu.vector_store %arg6[%c0_23, %c256], %53 {strides = array<i32>} : memref<4x768xf32, #tpu.memory_space<vmem>>, vector<1x8xf32>,
    %cst_24 = arith.constant 14.2857141 : f32
    %55 = vector.broadcast %cst_24 : f32 to vector<1x8xf32>
    %56 = arith.mulf %40, %55 : vector<1x8xf32>
    %57 = math.exp %56 : vector<1x8xf32>
    %c0_25 = arith.constant 0 : index
    %c384 = arith.constant 384 : index
    %58 = vector.load %arg6[%c0_25, %c384] : memref<4x768xf32, #tpu.memory_space<vmem>>, vector<1x8xf32>
    tpu.vector_store %arg6[%c0_25, %c384], %57 {strides = array<i32>} : memref<4x768xf32, #tpu.memory_space<vmem>>, vector<1x8xf32>,
    %cst_26 = arith.constant 14.2857141 : f32
    %59 = vector.broadcast %cst_26 : f32 to vector<1x8xf32>
    %60 = arith.mulf %41, %59 : vector<1x8xf32>
    %61 = math.exp %60 : vector<1x8xf32>
    %c0_27 = arith.constant 0 : index
    %c512 = arith.constant 512 : index
    %62 = vector.load %arg6[%c0_27, %c512] : memref<4x768xf32, #tpu.memory_space<vmem>>, vector<1x8xf32>
    tpu.vector_store %arg6[%c0_27, %c512], %61 {strides = array<i32>} : memref<4x768xf32, #tpu.memory_space<vmem>>, vector<1x8xf32>,
    %cst_28 = arith.constant 14.2857141 : f32
    %63 = vector.broadcast %cst_28 : f32 to vector<1x8xf32>
    %64 = arith.mulf %42, %63 : vector<1x8xf32>
    %65 = math.exp %64 : vector<1x8xf32>
    %c0_29 = arith.constant 0 : index
    %c640 = arith.constant 640 : index
    %66 = vector.load %arg6[%c0_29, %c640] : memref<4x768xf32, #tpu.memory_space<vmem>>, vector<1x8xf32>
    tpu.vector_store %arg6[%c0_29, %c640], %65 {strides = array<i32>} : memref<4x768xf32, #tpu.memory_space<vmem>>, vector<1x8xf32>,
    %c4_i32 = arith.constant 4 : i32
    %67 = arith.muli %arg0, %c4_i32 : i32
    %c0_i32_30 = arith.constant 0 : i32
    %68 = arith.addi %67, %c0_i32_30 : i32
    %c0_31 = arith.constant 0 : index
    %c0_32 = arith.constant 0 : index
    %69 = vector.load %arg5[%c0_31, %c0_32] : memref<4x128xf32, #tpu.memory_space<vmem>>, vector<1x128xf32>
    %70 = vector.extract_strided_slice %27 {offsets = [0, 0], sizes = [1, 128], strides = [1, 1]} : vector<8x128xf32> to vector<1x128xf32>
    %cst_33 = arith.constant 5.000000e-01 : f32
    %71 = vector.broadcast %cst_33 : f32 to vector<1x128xf32>
    %72 = arith.mulf %70, %71 : vector<1x128xf32>
    %cst_34 = arith.constant 5.000000e-01 : f32
    %73 = vector.broadcast %cst_34 : f32 to vector<1x128xf32>
    %74 = arith.mulf %69, %73 : vector<1x128xf32>
    %75 = arith.addf %72, %74 : vector<1x128xf32>
    %76 = vector.extract_strided_slice %75 {offsets = [0, 0], sizes = [1, 32], strides = [1, 1]} : vector<1x128xf32> to vector<1x32xf32>
    %77 = arith.mulf %76, %76 : vector<1x32xf32>
    %cst_35 = arith.constant dense<0.000000e+00> : vector<1xf32>
    %78 = vector.multi_reduction <add>, %77, %cst_35 [1] : vector<1x32xf32> to vector<1xf32>
    %79 = vector.shape_cast %78 : vector<1xf32> to vector<1x1xf32>
    %80 = math.rsqrt %79 : vector<1x1xf32>
    %81 = vector.broadcast %80 : vector<1x1xf32> to vector<1x32xf32>
    %82 = arith.mulf %76, %81 : vector<1x32xf32>
    %83 = arith.index_cast %68 : i32 to index
    %c0_36 = arith.constant 0 : index
    %84 = vector.load %arg10[%83, %c0_36] : memref<4x128xf32, #tpu.memory_space<vmem>>, vector<1x32xf32>
    tpu.vector_store %arg10[%83, %c0_36], %82 {strides = array<i32>} : memref<4x128xf32, #tpu.memory_space<vmem>>, vector<1x32xf32>,
    %85 = vector.extract_strided_slice %75 {offsets = [0, 32], sizes = [1, 32], strides = [1, 1]} : vector<1x128xf32> to vector<1x32xf32>
    %86 = arith.mulf %85, %85 : vector<1x32xf32>
    %cst_37 = arith.constant dense<0.000000e+00> : vector<1xf32>
    %87 = vector.multi_reduction <add>, %86, %cst_37 [1] : vector<1x32xf32> to vector<1xf32>
    %88 = vector.shape_cast %87 : vector<1xf32> to vector<1x1xf32>
    %89 = math.rsqrt %88 : vector<1x1xf32>
    %90 = vector.broadcast %89 : vector<1x1xf32> to vector<1x32xf32>
    %91 = arith.mulf %85, %90 : vector<1x32xf32>
    %92 = arith.index_cast %68 : i32 to index
    %c32 = arith.constant 32 : index
    %93 = vector.load %arg10[%92, %c32] : memref<4x128xf32, #tpu.memory_space<vmem>>, vector<1x32xf32>
    tpu.vector_store %arg10[%92, %c32], %91 {strides = array<i32>} : memref<4x128xf32, #tpu.memory_space<vmem>>, vector<1x32xf32>,
    %94 = vector.extract_strided_slice %75 {offsets = [0, 64], sizes = [1, 32], strides = [1, 1]} : vector<1x128xf32> to vector<1x32xf32>
    %95 = arith.mulf %94, %94 : vector<1x32xf32>
    %cst_38 = arith.constant dense<0.000000e+00> : vector<1xf32>
    %96 = vector.multi_reduction <add>, %95, %cst_38 [1] : vector<1x32xf32> to vector<1xf32>
    %97 = vector.shape_cast %96 : vector<1xf32> to vector<1x1xf32>
    %98 = math.rsqrt %97 : vector<1x1xf32>
    %99 = vector.broadcast %98 : vector<1x1xf32> to vector<1x32xf32>
    %100 = arith.mulf %94, %99 : vector<1x32xf32>
    %101 = arith.index_cast %68 : i32 to index
    %c64 = arith.constant 64 : index
    %102 = vector.load %arg10[%101, %c64] : memref<4x128xf32, #tpu.memory_space<vmem>>, vector<1x32xf32>
    tpu.vector_store %arg10[%101, %c64], %100 {strides = array<i32>} : memref<4x128xf32, #tpu.memory_space<vmem>>, vector<1x32xf32>,
    %103 = vector.extract_strided_slice %75 {offsets = [0, 96], sizes = [1, 32], strides = [1, 1]} : vector<1x128xf32> to vector<1x32xf32>
    %104 = arith.mulf %103, %103 : vector<1x32xf32>
    %cst_39 = arith.constant dense<0.000000e+00> : vector<1xf32>
    %105 = vector.multi_reduction <add>, %104, %cst_39 [1] : vector<1x32xf32> to vector<1xf32>
    %106 = vector.shape_cast %105 : vector<1xf32> to vector<1x1xf32>
    %107 = math.rsqrt %106 : vector<1x1xf32>
    %108 = vector.broadcast %107 : vector<1x1xf32> to vector<1x32xf32>
    %109 = arith.mulf %103, %108 : vector<1x32xf32>
    %110 = arith.index_cast %68 : i32 to index
    %c96 = arith.constant 96 : index
    %111 = vector.load %arg10[%110, %c96] : memref<4x128xf32, #tpu.memory_space<vmem>>, vector<1x32xf32>
    tpu.vector_store %arg10[%110, %c96], %109 {strides = array<i32>} : memref<4x128xf32, #tpu.memory_space<vmem>>, vector<1x32xf32>,
    %c32_i32_40 = arith.constant 32 : i32
    %112 = arith.muli %9, %c32_i32_40 : i32
    %c8_i32 = arith.constant 8 : i32
    %113 = arith.addi %112, %c8_i32 : i32
    %114 = tpu.assume_multiple %113, 8 : i32
    %115 = arith.index_cast %114 : i32 to index
    %c0_41 = arith.constant 0 : index
    %116 = vector.load %arg8[%115, %c0_41] : memref<64x128xf32, #tpu.memory_space<vmem>>, vector<8x128xf32>
    %c4 = arith.constant 4 : index
    %c0_42 = arith.constant 0 : index
    %117 = vector.load %arg4[%c4, %c0_42] : memref<16x32xf32, #tpu.memory_space<vmem>>, vector<4x32xf32>
    %118 = vector.extract_strided_slice %116 {offsets = [0, 0], sizes = [8, 32], strides = [1, 1]} : vector<8x128xf32> to vector<8x32xf32>
    %cst_43 = arith.constant dense<0.000000e+00> : vector<4x8xf32>
    %119 = tpu.matmul %117, %118, %cst_43 {dimension_numbers = #tpu.dot_dimension_numbers<[1], [1], [0], [0], [0, 0, 1, 0], [], []>} : vector<4x32xf32>, vector<8x32xf32>, vector<4x8xf32> -> vector<4x8xf32>
    %120 = vector.extract_strided_slice %116 {offsets = [0, 32], sizes = [8, 32], strides = [1, 1]} : vector<8x128xf32> to vector<8x32xf32>
    %cst_44 = arith.constant dense<0.000000e+00> : vector<4x8xf32>
    %121 = tpu.matmul %117, %120, %cst_44 {dimension_numbers = #tpu.dot_dimension_numbers<[1], [1], [0], [0], [0, 0, 1, 0], [], []>} : vector<4x32xf32>, vector<8x32xf32>, vector<4x8xf32> -> vector<4x8xf32>
    %122 = vector.extract_strided_slice %116 {offsets = [0, 64], sizes = [8, 32], strides = [1, 1]} : vector<8x128xf32> to vector<8x32xf32>
    %cst_45 = arith.constant dense<0.000000e+00> : vector<4x8xf32>
    %123 = tpu.matmul %117, %122, %cst_45 {dimension_numbers = #tpu.dot_dimension_numbers<[1], [1], [0], [0], [0, 0, 1, 0], [], []>} : vector<4x32xf32>, vector<8x32xf32>, vector<4x8xf32> -> vector<4x8xf32>
    %124 = vector.extract_strided_slice %116 {offsets = [0, 96], sizes = [8, 32], strides = [1, 1]} : vector<8x128xf32> to vector<8x32xf32>
    %cst_46 = arith.constant dense<0.000000e+00> : vector<4x8xf32>
    %125 = tpu.matmul %117, %124, %cst_46 {dimension_numbers = #tpu.dot_dimension_numbers<[1], [1], [0], [0], [0, 0, 1, 0], [], []>} : vector<4x32xf32>, vector<8x32xf32>, vector<4x8xf32> -> vector<4x8xf32>
    %126 = vector.extract_strided_slice %123 {offsets = [0, 0], sizes = [1, 8], strides = [1, 1]} : vector<4x8xf32> to vector<1x8xf32>
    %127 = vector.extract_strided_slice %119 {offsets = [1, 0], sizes = [1, 8], strides = [1, 1]} : vector<4x8xf32> to vector<1x8xf32>
    %128 = vector.extract_strided_slice %121 {offsets = [2, 0], sizes = [1, 8], strides = [1, 1]} : vector<4x8xf32> to vector<1x8xf32>
    %129 = vector.extract_strided_slice %125 {offsets = [1, 0], sizes = [1, 8], strides = [1, 1]} : vector<4x8xf32> to vector<1x8xf32>
    %130 = vector.extract_strided_slice %125 {offsets = [0, 0], sizes = [1, 8], strides = [1, 1]} : vector<4x8xf32> to vector<1x8xf32>
    %131 = vector.extract_strided_slice %123 {offsets = [3, 0], sizes = [1, 8], strides = [1, 1]} : vector<4x8xf32> to vector<1x8xf32>
    %cst_47 = arith.constant 14.2857141 : f32
    %132 = vector.broadcast %cst_47 : f32 to vector<1x8xf32>
    %133 = arith.mulf %126, %132 : vector<1x8xf32>
    %134 = math.exp %133 : vector<1x8xf32>
    %c1 = arith.constant 1 : index
    %c0_48 = arith.constant 0 : index
    %135 = vector.load %arg6[%c1, %c0_48] : memref<4x768xf32, #tpu.memory_space<vmem>>, vector<1x8xf32>
    tpu.vector_store %arg6[%c1, %c0_48], %134 {strides = array<i32>} : memref<4x768xf32, #tpu.memory_space<vmem>>, vector<1x8xf32>,
    %cst_49 = arith.constant 14.2857141 : f32
    %136 = vector.broadcast %cst_49 : f32 to vector<1x8xf32>
    %137 = arith.mulf %127, %136 : vector<1x8xf32>
    %138 = math.exp %137 : vector<1x8xf32>
    %c1_50 = arith.constant 1 : index
    %c128_51 = arith.constant 128 : index
    %139 = vector.load %arg6[%c1_50, %c128_51] : memref<4x768xf32, #tpu.memory_space<vmem>>, vector<1x8xf32>
    tpu.vector_store %arg6[%c1_50, %c128_51], %138 {strides = array<i32>} : memref<4x768xf32, #tpu.memory_space<vmem>>, vector<1x8xf32>,
    %cst_52 = arith.constant 14.2857141 : f32
    %140 = vector.broadcast %cst_52 : f32 to vector<1x8xf32>
    %141 = arith.mulf %128, %140 : vector<1x8xf32>
    %142 = math.exp %141 : vector<1x8xf32>
    %c1_53 = arith.constant 1 : index
    %c256_54 = arith.constant 256 : index
    %143 = vector.load %arg6[%c1_53, %c256_54] : memref<4x768xf32, #tpu.memory_space<vmem>>, vector<1x8xf32>
    tpu.vector_store %arg6[%c1_53, %c256_54], %142 {strides = array<i32>} : memref<4x768xf32, #tpu.memory_space<vmem>>, vector<1x8xf32>,
    %cst_55 = arith.constant 14.2857141 : f32
    %144 = vector.broadcast %cst_55 : f32 to vector<1x8xf32>
    %145 = arith.mulf %129, %144 : vector<1x8xf32>
    %146 = math.exp %145 : vector<1x8xf32>
    %c1_56 = arith.constant 1 : index
    %c384_57 = arith.constant 384 : index
    %147 = vector.load %arg6[%c1_56, %c384_57] : memref<4x768xf32, #tpu.memory_space<vmem>>, vector<1x8xf32>
    tpu.vector_store %arg6[%c1_56, %c384_57], %146 {strides = array<i32>} : memref<4x768xf32, #tpu.memory_space<vmem>>, vector<1x8xf32>,
    %cst_58 = arith.constant 14.2857141 : f32
    %148 = vector.broadcast %cst_58 : f32 to vector<1x8xf32>
    %149 = arith.mulf %130, %148 : vector<1x8xf32>
    %150 = math.exp %149 : vector<1x8xf32>
    %c1_59 = arith.constant 1 : index
    %c512_60 = arith.constant 512 : index
    %151 = vector.load %arg6[%c1_59, %c512_60] : memref<4x768xf32, #tpu.memory_space<vmem>>, vector<1x8xf32>
    tpu.vector_store %arg6[%c1_59, %c512_60], %150 {strides = array<i32>} : memref<4x768xf32, #tpu.memory_space<vmem>>, vector<1x8xf32>,
    %cst_61 = arith.constant 14.2857141 : f32
    %152 = vector.broadcast %cst_61 : f32 to vector<1x8xf32>
    %153 = arith.mulf %131, %152 : vector<1x8xf32>
    %154 = math.exp %153 : vector<1x8xf32>
    %c1_62 = arith.constant 1 : index
    %c640_63 = arith.constant 640 : index
    %155 = vector.load %arg6[%c1_62, %c640_63] : memref<4x768xf32, #tpu.memory_space<vmem>>, vector<1x8xf32>
    tpu.vector_store %arg6[%c1_62, %c640_63], %154 {strides = array<i32>} : memref<4x768xf32, #tpu.memory_space<vmem>>, vector<1x8xf32>,
    %c4_i32_64 = arith.constant 4 : i32
    %156 = arith.muli %arg0, %c4_i32_64 : i32
    %c1_i32_65 = arith.constant 1 : i32
    %157 = arith.addi %156, %c1_i32_65 : i32
    %c1_66 = arith.constant 1 : index
    %c0_67 = arith.constant 0 : index
    %158 = vector.load %arg5[%c1_66, %c0_67] : memref<4x128xf32, #tpu.memory_space<vmem>>, vector<1x128xf32>
    %159 = vector.extract_strided_slice %116 {offsets = [0, 0], sizes = [1, 128], strides = [1, 1]} : vector<8x128xf32> to vector<1x128xf32>
    %cst_68 = arith.constant 5.000000e-01 : f32
    %160 = vector.broadcast %cst_68 : f32 to vector<1x128xf32>
    %161 = arith.mulf %159, %160 : vector<1x128xf32>
    %cst_69 = arith.constant 5.000000e-01 : f32
    %162 = vector.broadcast %cst_69 : f32 to vector<1x128xf32>
    %163 = arith.mulf %158, %162 : vector<1x128xf32>
    %164 = arith.addf %161, %163 : vector<1x128xf32>
    %165 = vector.extract_strided_slice %164 {offsets = [0, 0], sizes = [1, 32], strides = [1, 1]} : vector<1x128xf32> to vector<1x32xf32>
    %166 = arith.mulf %165, %165 : vector<1x32xf32>
    %cst_70 = arith.constant dense<0.000000e+00> : vector<1xf32>
    %167 = vector.multi_reduction <add>, %166, %cst_70 [1] : vector<1x32xf32> to vector<1xf32>
    %168 = vector.shape_cast %167 : vector<1xf32> to vector<1x1xf32>
    %169 = math.rsqrt %168 : vector<1x1xf32>
    %170 = vector.broadcast %169 : vector<1x1xf32> to vector<1x32xf32>
    %171 = arith.mulf %165, %170 : vector<1x32xf32>
    %172 = arith.index_cast %157 : i32 to index
    %c0_71 = arith.constant 0 : index
    %173 = vector.load %arg10[%172, %c0_71] : memref<4x128xf32, #tpu.memory_space<vmem>>, vector<1x32xf32>
    tpu.vector_store %arg10[%172, %c0_71], %171 {strides = array<i32>} : memref<4x128xf32, #tpu.memory_space<vmem>>, vector<1x32xf32>,
    %174 = vector.extract_strided_slice %164 {offsets = [0, 32], sizes = [1, 32], strides = [1, 1]} : vector<1x128xf32> to vector<1x32xf32>
    %175 = arith.mulf %174, %174 : vector<1x32xf32>
    %cst_72 = arith.constant dense<0.000000e+00> : vector<1xf32>
    %176 = vector.multi_reduction <add>, %175, %cst_72 [1] : vector<1x32xf32> to vector<1xf32>
    %177 = vector.shape_cast %176 : vector<1xf32> to vector<1x1xf32>
    %178 = math.rsqrt %177 : vector<1x1xf32>
    %179 = vector.broadcast %178 : vector<1x1xf32> to vector<1x32xf32>
    %180 = arith.mulf %174, %179 : vector<1x32xf32>
    %181 = arith.index_cast %157 : i32 to index
    %c32_73 = arith.constant 32 : index
    %182 = vector.load %arg10[%181, %c32_73] : memref<4x128xf32, #tpu.memory_space<vmem>>, vector<1x32xf32>
    tpu.vector_store %arg10[%181, %c32_73], %180 {strides = array<i32>} : memref<4x128xf32, #tpu.memory_space<vmem>>, vector<1x32xf32>,
    %183 = vector.extract_strided_slice %164 {offsets = [0, 64], sizes = [1, 32], strides = [1, 1]} : vector<1x128xf32> to vector<1x32xf32>
    %184 = arith.mulf %183, %183 : vector<1x32xf32>
    %cst_74 = arith.constant dense<0.000000e+00> : vector<1xf32>
    %185 = vector.multi_reduction <add>, %184, %cst_74 [1] : vector<1x32xf32> to vector<1xf32>
    %186 = vector.shape_cast %185 : vector<1xf32> to vector<1x1xf32>
    %187 = math.rsqrt %186 : vector<1x1xf32>
    %188 = vector.broadcast %187 : vector<1x1xf32> to vector<1x32xf32>
    %189 = arith.mulf %183, %188 : vector<1x32xf32>
    %190 = arith.index_cast %157 : i32 to index
    %c64_75 = arith.constant 64 : index
    %191 = vector.load %arg10[%190, %c64_75] : memref<4x128xf32, #tpu.memory_space<vmem>>, vector<1x32xf32>
    tpu.vector_store %arg10[%190, %c64_75], %189 {strides = array<i32>} : memref<4x128xf32, #tpu.memory_space<vmem>>, vector<1x32xf32>,
    %192 = vector.extract_strided_slice %164 {offsets = [0, 96], sizes = [1, 32], strides = [1, 1]} : vector<1x128xf32> to vector<1x32xf32>
    %193 = arith.mulf %192, %192 : vector<1x32xf32>
    %cst_76 = arith.constant dense<0.000000e+00> : vector<1xf32>
    %194 = vector.multi_reduction <add>, %193, %cst_76 [1] : vector<1x32xf32> to vector<1xf32>
    %195 = vector.shape_cast %194 : vector<1xf32> to vector<1x1xf32>
    %196 = math.rsqrt %195 : vector<1x1xf32>
    %197 = vector.broadcast %196 : vector<1x1xf32> to vector<1x32xf32>
    %198 = arith.mulf %192, %197 : vector<1x32xf32>
    %199 = arith.index_cast %157 : i32 to index
    %c96_77 = arith.constant 96 : index
    %200 = vector.load %arg10[%199, %c96_77] : memref<4x128xf32, #tpu.memory_space<vmem>>, vector<1x32xf32>
    tpu.vector_store %arg10[%199, %c96_77], %198 {strides = array<i32>} : memref<4x128xf32, #tpu.memory_space<vmem>>, vector<1x32xf32>,
    %c32_i32_78 = arith.constant 32 : i32
    %201 = arith.muli %9, %c32_i32_78 : i32
    %c16_i32 = arith.constant 16 : i32
    %202 = arith.addi %201, %c16_i32 : i32
    %203 = tpu.assume_multiple %202, 8 : i32
    %204 = arith.index_cast %203 : i32 to index
    %c0_79 = arith.constant 0 : index
    %205 = vector.load %arg8[%204, %c0_79] : memref<64x128xf32, #tpu.memory_space<vmem>>, vector<8x128xf32>
    %c8 = arith.constant 8 : index
    %c0_80 = arith.constant 0 : index
    %206 = vector.load %arg4[%c8, %c0_80] : memref<16x32xf32, #tpu.memory_space<vmem>>, vector<4x32xf32>
    %207 = vector.extract_strided_slice %205 {offsets = [0, 0], sizes = [8, 32], strides = [1, 1]} : vector<8x128xf32> to vector<8x32xf32>
    %cst_81 = arith.constant dense<0.000000e+00> : vector<4x8xf32>
    %208 = tpu.matmul %206, %207, %cst_81 {dimension_numbers = #tpu.dot_dimension_numbers<[1], [1], [0], [0], [0, 0, 1, 0], [], []>} : vector<4x32xf32>, vector<8x32xf32>, vector<4x8xf32> -> vector<4x8xf32>
    %209 = vector.extract_strided_slice %205 {offsets = [0, 32], sizes = [8, 32], strides = [1, 1]} : vector<8x128xf32> to vector<8x32xf32>
    %cst_82 = arith.constant dense<0.000000e+00> : vector<4x8xf32>
    %210 = tpu.matmul %206, %209, %cst_82 {dimension_numbers = #tpu.dot_dimension_numbers<[1], [1], [0], [0], [0, 0, 1, 0], [], []>} : vector<4x32xf32>, vector<8x32xf32>, vector<4x8xf32> -> vector<4x8xf32>
    %211 = vector.extract_strided_slice %205 {offsets = [0, 64], sizes = [8, 32], strides = [1, 1]} : vector<8x128xf32> to vector<8x32xf32>
    %cst_83 = arith.constant dense<0.000000e+00> : vector<4x8xf32>
    %212 = tpu.matmul %206, %211, %cst_83 {dimension_numbers = #tpu.dot_dimension_numbers<[1], [1], [0], [0], [0, 0, 1, 0], [], []>} : vector<4x32xf32>, vector<8x32xf32>, vector<4x8xf32> -> vector<4x8xf32>
    %213 = vector.extract_strided_slice %205 {offsets = [0, 96], sizes = [8, 32], strides = [1, 1]} : vector<8x128xf32> to vector<8x32xf32>
    %cst_84 = arith.constant dense<0.000000e+00> : vector<4x8xf32>
    %214 = tpu.matmul %206, %213, %cst_84 {dimension_numbers = #tpu.dot_dimension_numbers<[1], [1], [0], [0], [0, 0, 1, 0], [], []>} : vector<4x32xf32>, vector<8x32xf32>, vector<4x8xf32> -> vector<4x8xf32>
    %215 = vector.extract_strided_slice %212 {offsets = [0, 0], sizes = [1, 8], strides = [1, 1]} : vector<4x8xf32> to vector<1x8xf32>
    %216 = vector.extract_strided_slice %208 {offsets = [1, 0], sizes = [1, 8], strides = [1, 1]} : vector<4x8xf32> to vector<1x8xf32>
    %217 = vector.extract_strided_slice %210 {offsets = [2, 0], sizes = [1, 8], strides = [1, 1]} : vector<4x8xf32> to vector<1x8xf32>
    %218 = vector.extract_strided_slice %214 {offsets = [1, 0], sizes = [1, 8], strides = [1, 1]} : vector<4x8xf32> to vector<1x8xf32>
    %219 = vector.extract_strided_slice %214 {offsets = [0, 0], sizes = [1, 8], strides = [1, 1]} : vector<4x8xf32> to vector<1x8xf32>
    %220 = vector.extract_strided_slice %212 {offsets = [3, 0], sizes = [1, 8], strides = [1, 1]} : vector<4x8xf32> to vector<1x8xf32>
    %cst_85 = arith.constant 14.2857141 : f32
    %221 = vector.broadcast %cst_85 : f32 to vector<1x8xf32>
    %222 = arith.mulf %215, %221 : vector<1x8xf32>
    %223 = math.exp %222 : vector<1x8xf32>
    %c2 = arith.constant 2 : index
    %c0_86 = arith.constant 0 : index
    %224 = vector.load %arg6[%c2, %c0_86] : memref<4x768xf32, #tpu.memory_space<vmem>>, vector<1x8xf32>
    tpu.vector_store %arg6[%c2, %c0_86], %223 {strides = array<i32>} : memref<4x768xf32, #tpu.memory_space<vmem>>, vector<1x8xf32>,
    %cst_87 = arith.constant 14.2857141 : f32
    %225 = vector.broadcast %cst_87 : f32 to vector<1x8xf32>
    %226 = arith.mulf %216, %225 : vector<1x8xf32>
    %227 = math.exp %226 : vector<1x8xf32>
    %c2_88 = arith.constant 2 : index
    %c128_89 = arith.constant 128 : index
    %228 = vector.load %arg6[%c2_88, %c128_89] : memref<4x768xf32, #tpu.memory_space<vmem>>, vector<1x8xf32>
    tpu.vector_store %arg6[%c2_88, %c128_89], %227 {strides = array<i32>} : memref<4x768xf32, #tpu.memory_space<vmem>>, vector<1x8xf32>,
    %cst_90 = arith.constant 14.2857141 : f32
    %229 = vector.broadcast %cst_90 : f32 to vector<1x8xf32>
    %230 = arith.mulf %217, %229 : vector<1x8xf32>
    %231 = math.exp %230 : vector<1x8xf32>
    %c2_91 = arith.constant 2 : index
    %c256_92 = arith.constant 256 : index
    %232 = vector.load %arg6[%c2_91, %c256_92] : memref<4x768xf32, #tpu.memory_space<vmem>>, vector<1x8xf32>
    tpu.vector_store %arg6[%c2_91, %c256_92], %231 {strides = array<i32>} : memref<4x768xf32, #tpu.memory_space<vmem>>, vector<1x8xf32>,
    %cst_93 = arith.constant 14.2857141 : f32
    %233 = vector.broadcast %cst_93 : f32 to vector<1x8xf32>
    %234 = arith.mulf %218, %233 : vector<1x8xf32>
    %235 = math.exp %234 : vector<1x8xf32>
    %c2_94 = arith.constant 2 : index
    %c384_95 = arith.constant 384 : index
    %236 = vector.load %arg6[%c2_94, %c384_95] : memref<4x768xf32, #tpu.memory_space<vmem>>, vector<1x8xf32>
    tpu.vector_store %arg6[%c2_94, %c384_95], %235 {strides = array<i32>} : memref<4x768xf32, #tpu.memory_space<vmem>>, vector<1x8xf32>,
    %cst_96 = arith.constant 14.2857141 : f32
    %237 = vector.broadcast %cst_96 : f32 to vector<1x8xf32>
    %238 = arith.mulf %219, %237 : vector<1x8xf32>
    %239 = math.exp %238 : vector<1x8xf32>
    %c2_97 = arith.constant 2 : index
    %c512_98 = arith.constant 512 : index
    %240 = vector.load %arg6[%c2_97, %c512_98] : memref<4x768xf32, #tpu.memory_space<vmem>>, vector<1x8xf32>
    tpu.vector_store %arg6[%c2_97, %c512_98], %239 {strides = array<i32>} : memref<4x768xf32, #tpu.memory_space<vmem>>, vector<1x8xf32>,
    %cst_99 = arith.constant 14.2857141 : f32
    %241 = vector.broadcast %cst_99 : f32 to vector<1x8xf32>
    %242 = arith.mulf %220, %241 : vector<1x8xf32>
    %243 = math.exp %242 : vector<1x8xf32>
    %c2_100 = arith.constant 2 : index
    %c640_101 = arith.constant 640 : index
    %244 = vector.load %arg6[%c2_100, %c640_101] : memref<4x768xf32, #tpu.memory_space<vmem>>, vector<1x8xf32>
    tpu.vector_store %arg6[%c2_100, %c640_101], %243 {strides = array<i32>} : memref<4x768xf32, #tpu.memory_space<vmem>>, vector<1x8xf32>,
    %c4_i32_102 = arith.constant 4 : i32
    %245 = arith.muli %arg0, %c4_i32_102 : i32
    %c2_i32_103 = arith.constant 2 : i32
    %246 = arith.addi %245, %c2_i32_103 : i32
    %c2_104 = arith.constant 2 : index
    %c0_105 = arith.constant 0 : index
    %247 = vector.load %arg5[%c2_104, %c0_105] : memref<4x128xf32, #tpu.memory_space<vmem>>, vector<1x128xf32>
    %248 = vector.extract_strided_slice %205 {offsets = [0, 0], sizes = [1, 128], strides = [1, 1]} : vector<8x128xf32> to vector<1x128xf32>
    %cst_106 = arith.constant 5.000000e-01 : f32
    %249 = vector.broadcast %cst_106 : f32 to vector<1x128xf32>
    %250 = arith.mulf %248, %249 : vector<1x128xf32>
    %cst_107 = arith.constant 5.000000e-01 : f32
    %251 = vector.broadcast %cst_107 : f32 to vector<1x128xf32>
    %252 = arith.mulf %247, %251 : vector<1x128xf32>
    %253 = arith.addf %250, %252 : vector<1x128xf32>
    %254 = vector.extract_strided_slice %253 {offsets = [0, 0], sizes = [1, 32], strides = [1, 1]} : vector<1x128xf32> to vector<1x32xf32>
    %255 = arith.mulf %254, %254 : vector<1x32xf32>
    %cst_108 = arith.constant dense<0.000000e+00> : vector<1xf32>
    %256 = vector.multi_reduction <add>, %255, %cst_108 [1] : vector<1x32xf32> to vector<1xf32>
    %257 = vector.shape_cast %256 : vector<1xf32> to vector<1x1xf32>
    %258 = math.rsqrt %257 : vector<1x1xf32>
    %259 = vector.broadcast %258 : vector<1x1xf32> to vector<1x32xf32>
    %260 = arith.mulf %254, %259 : vector<1x32xf32>
    %261 = arith.index_cast %246 : i32 to index
    %c0_109 = arith.constant 0 : index
    %262 = vector.load %arg10[%261, %c0_109] : memref<4x128xf32, #tpu.memory_space<vmem>>, vector<1x32xf32>
    tpu.vector_store %arg10[%261, %c0_109], %260 {strides = array<i32>} : memref<4x128xf32, #tpu.memory_space<vmem>>, vector<1x32xf32>,
    %263 = vector.extract_strided_slice %253 {offsets = [0, 32], sizes = [1, 32], strides = [1, 1]} : vector<1x128xf32> to vector<1x32xf32>
    %264 = arith.mulf %263, %263 : vector<1x32xf32>
    %cst_110 = arith.constant dense<0.000000e+00> : vector<1xf32>
    %265 = vector.multi_reduction <add>, %264, %cst_110 [1] : vector<1x32xf32> to vector<1xf32>
    %266 = vector.shape_cast %265 : vector<1xf32> to vector<1x1xf32>
    %267 = math.rsqrt %266 : vector<1x1xf32>
    %268 = vector.broadcast %267 : vector<1x1xf32> to vector<1x32xf32>
    %269 = arith.mulf %263, %268 : vector<1x32xf32>
    %270 = arith.index_cast %246 : i32 to index
    %c32_111 = arith.constant 32 : index
    %271 = vector.load %arg10[%270, %c32_111] : memref<4x128xf32, #tpu.memory_space<vmem>>, vector<1x32xf32>
    tpu.vector_store %arg10[%270, %c32_111], %269 {strides = array<i32>} : memref<4x128xf32, #tpu.memory_space<vmem>>, vector<1x32xf32>,
    %272 = vector.extract_strided_slice %253 {offsets = [0, 64], sizes = [1, 32], strides = [1, 1]} : vector<1x128xf32> to vector<1x32xf32>
    %273 = arith.mulf %272, %272 : vector<1x32xf32>
    %cst_112 = arith.constant dense<0.000000e+00> : vector<1xf32>
    %274 = vector.multi_reduction <add>, %273, %cst_112 [1] : vector<1x32xf32> to vector<1xf32>
    %275 = vector.shape_cast %274 : vector<1xf32> to vector<1x1xf32>
    %276 = math.rsqrt %275 : vector<1x1xf32>
    %277 = vector.broadcast %276 : vector<1x1xf32> to vector<1x32xf32>
    %278 = arith.mulf %272, %277 : vector<1x32xf32>
    %279 = arith.index_cast %246 : i32 to index
    %c64_113 = arith.constant 64 : index
    %280 = vector.load %arg10[%279, %c64_113] : memref<4x128xf32, #tpu.memory_space<vmem>>, vector<1x32xf32>
    tpu.vector_store %arg10[%279, %c64_113], %278 {strides = array<i32>} : memref<4x128xf32, #tpu.memory_space<vmem>>, vector<1x32xf32>,
    %281 = vector.extract_strided_slice %253 {offsets = [0, 96], sizes = [1, 32], strides = [1, 1]} : vector<1x128xf32> to vector<1x32xf32>
    %282 = arith.mulf %281, %281 : vector<1x32xf32>
    %cst_114 = arith.constant dense<0.000000e+00> : vector<1xf32>
    %283 = vector.multi_reduction <add>, %282, %cst_114 [1] : vector<1x32xf32> to vector<1xf32>
    %284 = vector.shape_cast %283 : vector<1xf32> to vector<1x1xf32>
    %285 = math.rsqrt %284 : vector<1x1xf32>
    %286 = vector.broadcast %285 : vector<1x1xf32> to vector<1x32xf32>
    %287 = arith.mulf %281, %286 : vector<1x32xf32>
    %288 = arith.index_cast %246 : i32 to index
    %c96_115 = arith.constant 96 : index
    %289 = vector.load %arg10[%288, %c96_115] : memref<4x128xf32, #tpu.memory_space<vmem>>, vector<1x32xf32>
    tpu.vector_store %arg10[%288, %c96_115], %287 {strides = array<i32>} : memref<4x128xf32, #tpu.memory_space<vmem>>, vector<1x32xf32>,
    %c32_i32_116 = arith.constant 32 : i32
    %290 = arith.muli %9, %c32_i32_116 : i32
    %c24_i32 = arith.constant 24 : i32
    %291 = arith.addi %290, %c24_i32 : i32
    %292 = tpu.assume_multiple %291, 8 : i32
    %293 = arith.index_cast %292 : i32 to index
    %c0_117 = arith.constant 0 : index
    %294 = vector.load %arg8[%293, %c0_117] : memref<64x128xf32, #tpu.memory_space<vmem>>, vector<8x128xf32>
    %c12 = arith.constant 12 : index
    %c0_118 = arith.constant 0 : index
    %295 = vector.load %arg4[%c12, %c0_118] : memref<16x32xf32, #tpu.memory_space<vmem>>, vector<4x32xf32>
    %296 = vector.extract_strided_slice %294 {offsets = [0, 0], sizes = [8, 32], strides = [1, 1]} : vector<8x128xf32> to vector<8x32xf32>
    %cst_119 = arith.constant dense<0.000000e+00> : vector<4x8xf32>
    %297 = tpu.matmul %295, %296, %cst_119 {dimension_numbers = #tpu.dot_dimension_numbers<[1], [1], [0], [0], [0, 0, 1, 0], [], []>} : vector<4x32xf32>, vector<8x32xf32>, vector<4x8xf32> -> vector<4x8xf32>
    %298 = vector.extract_strided_slice %294 {offsets = [0, 32], sizes = [8, 32], strides = [1, 1]} : vector<8x128xf32> to vector<8x32xf32>
    %cst_120 = arith.constant dense<0.000000e+00> : vector<4x8xf32>
    %299 = tpu.matmul %295, %298, %cst_120 {dimension_numbers = #tpu.dot_dimension_numbers<[1], [1], [0], [0], [0, 0, 1, 0], [], []>} : vector<4x32xf32>, vector<8x32xf32>, vector<4x8xf32> -> vector<4x8xf32>
    %300 = vector.extract_strided_slice %294 {offsets = [0, 64], sizes = [8, 32], strides = [1, 1]} : vector<8x128xf32> to vector<8x32xf32>
    %cst_121 = arith.constant dense<0.000000e+00> : vector<4x8xf32>
    %301 = tpu.matmul %295, %300, %cst_121 {dimension_numbers = #tpu.dot_dimension_numbers<[1], [1], [0], [0], [0, 0, 1, 0], [], []>} : vector<4x32xf32>, vector<8x32xf32>, vector<4x8xf32> -> vector<4x8xf32>
    %302 = vector.extract_strided_slice %294 {offsets = [0, 96], sizes = [8, 32], strides = [1, 1]} : vector<8x128xf32> to vector<8x32xf32>
    %cst_122 = arith.constant dense<0.000000e+00> : vector<4x8xf32>
    %303 = tpu.matmul %295, %302, %cst_122 {dimension_numbers = #tpu.dot_dimension_numbers<[1], [1], [0], [0], [0, 0, 1, 0], [], []>} : vector<4x32xf32>, vector<8x32xf32>, vector<4x8xf32> -> vector<4x8xf32>
    %304 = vector.extract_strided_slice %301 {offsets = [0, 0], sizes = [1, 8], strides = [1, 1]} : vector<4x8xf32> to vector<1x8xf32>
    %305 = vector.extract_strided_slice %297 {offsets = [1, 0], sizes = [1, 8], strides = [1, 1]} : vector<4x8xf32> to vector<1x8xf32>
    %306 = vector.extract_strided_slice %299 {offsets = [2, 0], sizes = [1, 8], strides = [1, 1]} : vector<4x8xf32> to vector<1x8xf32>
    %307 = vector.extract_strided_slice %303 {offsets = [1, 0], sizes = [1, 8], strides = [1, 1]} : vector<4x8xf32> to vector<1x8xf32>
    %308 = vector.extract_strided_slice %303 {offsets = [0, 0], sizes = [1, 8], strides = [1, 1]} : vector<4x8xf32> to vector<1x8xf32>
    %309 = vector.extract_strided_slice %301 {offsets = [3, 0], sizes = [1, 8], strides = [1, 1]} : vector<4x8xf32> to vector<1x8xf32>
    %cst_123 = arith.constant 14.2857141 : f32
    %310 = vector.broadcast %cst_123 : f32 to vector<1x8xf32>
    %311 = arith.mulf %304, %310 : vector<1x8xf32>
    %312 = math.exp %311 : vector<1x8xf32>
    %c3 = arith.constant 3 : index
    %c0_124 = arith.constant 0 : index
    %313 = vector.load %arg6[%c3, %c0_124] : memref<4x768xf32, #tpu.memory_space<vmem>>, vector<1x8xf32>
    tpu.vector_store %arg6[%c3, %c0_124], %312 {strides = array<i32>} : memref<4x768xf32, #tpu.memory_space<vmem>>, vector<1x8xf32>,
    %cst_125 = arith.constant 14.2857141 : f32
    %314 = vector.broadcast %cst_125 : f32 to vector<1x8xf32>
    %315 = arith.mulf %305, %314 : vector<1x8xf32>
    %316 = math.exp %315 : vector<1x8xf32>
    %c3_126 = arith.constant 3 : index
    %c128_127 = arith.constant 128 : index
    %317 = vector.load %arg6[%c3_126, %c128_127] : memref<4x768xf32, #tpu.memory_space<vmem>>, vector<1x8xf32>
    tpu.vector_store %arg6[%c3_126, %c128_127], %316 {strides = array<i32>} : memref<4x768xf32, #tpu.memory_space<vmem>>, vector<1x8xf32>,
    %cst_128 = arith.constant 14.2857141 : f32
    %318 = vector.broadcast %cst_128 : f32 to vector<1x8xf32>
    %319 = arith.mulf %306, %318 : vector<1x8xf32>
    %320 = math.exp %319 : vector<1x8xf32>
    %c3_129 = arith.constant 3 : index
    %c256_130 = arith.constant 256 : index
    %321 = vector.load %arg6[%c3_129, %c256_130] : memref<4x768xf32, #tpu.memory_space<vmem>>, vector<1x8xf32>
    tpu.vector_store %arg6[%c3_129, %c256_130], %320 {strides = array<i32>} : memref<4x768xf32, #tpu.memory_space<vmem>>, vector<1x8xf32>,
    %cst_131 = arith.constant 14.2857141 : f32
    %322 = vector.broadcast %cst_131 : f32 to vector<1x8xf32>
    %323 = arith.mulf %307, %322 : vector<1x8xf32>
    %324 = math.exp %323 : vector<1x8xf32>
    %c3_132 = arith.constant 3 : index
    %c384_133 = arith.constant 384 : index
    %325 = vector.load %arg6[%c3_132, %c384_133] : memref<4x768xf32, #tpu.memory_space<vmem>>, vector<1x8xf32>
    tpu.vector_store %arg6[%c3_132, %c384_133], %324 {strides = array<i32>} : memref<4x768xf32, #tpu.memory_space<vmem>>, vector<1x8xf32>,
    %cst_134 = arith.constant 14.2857141 : f32
    %326 = vector.broadcast %cst_134 : f32 to vector<1x8xf32>
    %327 = arith.mulf %308, %326 : vector<1x8xf32>
    %328 = math.exp %327 : vector<1x8xf32>
    %c3_135 = arith.constant 3 : index
    %c512_136 = arith.constant 512 : index
    %329 = vector.load %arg6[%c3_135, %c512_136] : memref<4x768xf32, #tpu.memory_space<vmem>>, vector<1x8xf32>
    tpu.vector_store %arg6[%c3_135, %c512_136], %328 {strides = array<i32>} : memref<4x768xf32, #tpu.memory_space<vmem>>, vector<1x8xf32>,
    %cst_137 = arith.constant 14.2857141 : f32
    %330 = vector.broadcast %cst_137 : f32 to vector<1x8xf32>
    %331 = arith.mulf %309, %330 : vector<1x8xf32>
    %332 = math.exp %331 : vector<1x8xf32>
    %c3_138 = arith.constant 3 : index
    %c640_139 = arith.constant 640 : index
    %333 = vector.load %arg6[%c3_138, %c640_139] : memref<4x768xf32, #tpu.memory_space<vmem>>, vector<1x8xf32>
    tpu.vector_store %arg6[%c3_138, %c640_139], %332 {strides = array<i32>} : memref<4x768xf32, #tpu.memory_space<vmem>>, vector<1x8xf32>,
    %c4_i32_140 = arith.constant 4 : i32
    %334 = arith.muli %arg0, %c4_i32_140 : i32
    %c3_i32 = arith.constant 3 : i32
    %335 = arith.addi %334, %c3_i32 : i32
    %c3_141 = arith.constant 3 : index
    %c0_142 = arith.constant 0 : index
    %336 = vector.load %arg5[%c3_141, %c0_142] : memref<4x128xf32, #tpu.memory_space<vmem>>, vector<1x128xf32>
    %337 = vector.extract_strided_slice %294 {offsets = [0, 0], sizes = [1, 128], strides = [1, 1]} : vector<8x128xf32> to vector<1x128xf32>
    %cst_143 = arith.constant 5.000000e-01 : f32
    %338 = vector.broadcast %cst_143 : f32 to vector<1x128xf32>
    %339 = arith.mulf %337, %338 : vector<1x128xf32>
    %cst_144 = arith.constant 5.000000e-01 : f32
    %340 = vector.broadcast %cst_144 : f32 to vector<1x128xf32>
    %341 = arith.mulf %336, %340 : vector<1x128xf32>
    %342 = arith.addf %339, %341 : vector<1x128xf32>
    %343 = vector.extract_strided_slice %342 {offsets = [0, 0], sizes = [1, 32], strides = [1, 1]} : vector<1x128xf32> to vector<1x32xf32>
    %344 = arith.mulf %343, %343 : vector<1x32xf32>
    %cst_145 = arith.constant dense<0.000000e+00> : vector<1xf32>
    %345 = vector.multi_reduction <add>, %344, %cst_145 [1] : vector<1x32xf32> to vector<1xf32>
    %346 = vector.shape_cast %345 : vector<1xf32> to vector<1x1xf32>
    %347 = math.rsqrt %346 : vector<1x1xf32>
    %348 = vector.broadcast %347 : vector<1x1xf32> to vector<1x32xf32>
    %349 = arith.mulf %343, %348 : vector<1x32xf32>
    %350 = arith.index_cast %335 : i32 to index
    %c0_146 = arith.constant 0 : index
    %351 = vector.load %arg10[%350, %c0_146] : memref<4x128xf32, #tpu.memory_space<vmem>>, vector<1x32xf32>
    tpu.vector_store %arg10[%350, %c0_146], %349 {strides = array<i32>} : memref<4x128xf32, #tpu.memory_space<vmem>>, vector<1x32xf32>,
    %352 = vector.extract_strided_slice %342 {offsets = [0, 32], sizes = [1, 32], strides = [1, 1]} : vector<1x128xf32> to vector<1x32xf32>
    %353 = arith.mulf %352, %352 : vector<1x32xf32>
    %cst_147 = arith.constant dense<0.000000e+00> : vector<1xf32>
    %354 = vector.multi_reduction <add>, %353, %cst_147 [1] : vector<1x32xf32> to vector<1xf32>
    %355 = vector.shape_cast %354 : vector<1xf32> to vector<1x1xf32>
    %356 = math.rsqrt %355 : vector<1x1xf32>
    %357 = vector.broadcast %356 : vector<1x1xf32> to vector<1x32xf32>
    %358 = arith.mulf %352, %357 : vector<1x32xf32>
    %359 = arith.index_cast %335 : i32 to index
    %c32_148 = arith.constant 32 : index
    %360 = vector.load %arg10[%359, %c32_148] : memref<4x128xf32, #tpu.memory_space<vmem>>, vector<1x32xf32>
    tpu.vector_store %arg10[%359, %c32_148], %358 {strides = array<i32>} : memref<4x128xf32, #tpu.memory_space<vmem>>, vector<1x32xf32>,
    %361 = vector.extract_strided_slice %342 {offsets = [0, 64], sizes = [1, 32], strides = [1, 1]} : vector<1x128xf32> to vector<1x32xf32>
    %362 = arith.mulf %361, %361 : vector<1x32xf32>
    %cst_149 = arith.constant dense<0.000000e+00> : vector<1xf32>
    %363 = vector.multi_reduction <add>, %362, %cst_149 [1] : vector<1x32xf32> to vector<1xf32>
    %364 = vector.shape_cast %363 : vector<1xf32> to vector<1x1xf32>
    %365 = math.rsqrt %364 : vector<1x1xf32>
    %366 = vector.broadcast %365 : vector<1x1xf32> to vector<1x32xf32>
    %367 = arith.mulf %361, %366 : vector<1x32xf32>
    %368 = arith.index_cast %335 : i32 to index
    %c64_150 = arith.constant 64 : index
    %369 = vector.load %arg10[%368, %c64_150] : memref<4x128xf32, #tpu.memory_space<vmem>>, vector<1x32xf32>
    tpu.vector_store %arg10[%368, %c64_150], %367 {strides = array<i32>} : memref<4x128xf32, #tpu.memory_space<vmem>>, vector<1x32xf32>,
    %370 = vector.extract_strided_slice %342 {offsets = [0, 96], sizes = [1, 32], strides = [1, 1]} : vector<1x128xf32> to vector<1x32xf32>
    %371 = arith.mulf %370, %370 : vector<1x32xf32>
    %cst_151 = arith.constant dense<0.000000e+00> : vector<1xf32>
    %372 = vector.multi_reduction <add>, %371, %cst_151 [1] : vector<1x32xf32> to vector<1xf32>
    %373 = vector.shape_cast %372 : vector<1xf32> to vector<1x1xf32>
    %374 = math.rsqrt %373 : vector<1x1xf32>
    %375 = vector.broadcast %374 : vector<1x1xf32> to vector<1x32xf32>
    %376 = arith.mulf %370, %375 : vector<1x32xf32>
    %377 = arith.index_cast %335 : i32 to index
    %c96_152 = arith.constant 96 : index
    %378 = vector.load %arg10[%377, %c96_152] : memref<4x128xf32, #tpu.memory_space<vmem>>, vector<1x32xf32>
    tpu.vector_store %arg10[%377, %c96_152], %376 {strides = array<i32>} : memref<4x128xf32, #tpu.memory_space<vmem>>, vector<1x32xf32>,
    %c0_i32_153 = arith.constant 0 : i32
    %379 = arith.cmpi eq, %arg0, %c0_i32_153 : i32
    %380 = arith.extui %379 : i1 to i32
    %c0_i32_154 = arith.constant 0 : i32
    %381 = arith.cmpi ne, %380, %c0_i32_154 : i32
    scf.if %381 {
      %c0_i32_155 = arith.constant 0 : i32
      %c4_i32_156 = arith.constant 4 : i32
      %382 = arith.addi %c0_i32_155, %c4_i32_156 : i32
      %c1_i32_157 = arith.constant 1 : i32
      scf.for %arg12 = %c0_i32_155 to %382 step %c1_i32_157  : i32 {
        %c1_i32_164 = arith.constant 1 : i32
        %387 = arith.muli %arg12, %c1_i32_164 : i32
        %c0_i32_165 = arith.constant 0 : i32
        %388 = arith.addi %c0_i32_165, %387 : i32
        %389 = arith.index_cast %388 : i32 to index
        %390 = memref.load %arg2[%389] : memref<4xi32, #tpu.memory_space<smem>>
        %c0_i32_166 = arith.constant 0 : i32
        %c0_i32_167 = arith.constant 0 : i32
        %391 = tpu.memref_slice %arg10[%388, %c0_i32_167] : memref<4x128xf32, #tpu.memory_space<vmem>> -> memref<1x128xf32, #tpu.memory_space<vmem>>
        %c0_i32_168 = arith.constant 0 : i32
        %392 = tpu.memref_slice %arg7[%390, %c0_i32_168] : memref<64x128xf32, #tpu.memory_space<any>> -> memref<1x128xf32, #tpu.memory_space<any>>
        %393 = tpu.memref_slice %arg11[%c0_i32_166] : memref<1x!tpu.dma_semaphore, #tpu.memory_space<semaphore_mem>> -> memref<1x!tpu.dma_semaphore, #tpu.memory_space<semaphore_mem>>
        %394 = tpu.memref_squeeze %393 : memref<1x!tpu.dma_semaphore, #tpu.memory_space<semaphore_mem>> -> memref<!tpu.dma_semaphore, #tpu.memory_space<semaphore_mem>>
        tpu.enqueue_dma source(%391 : memref<1x128xf32, #tpu.memory_space<vmem>>) target(%392 : memref<1x128xf32, #tpu.memory_space<any>>) target_semaphore(%394 : memref<!tpu.dma_semaphore, #tpu.memory_space<semaphore_mem>>)
      }
      %c4_i32_158 = arith.constant 4 : i32
      %c0_i32_159 = arith.constant 0 : i32
      %c0_i32_160 = arith.constant 0 : i32
      %c0_i32_161 = arith.constant 0 : i32
      %383 = tpu.memref_slice %arg10[%c0_i32_160, %c0_i32_161] : memref<4x128xf32, #tpu.memory_space<vmem>> -> memref<4x128xf32, #tpu.memory_space<vmem>>
      %c0_i32_162 = arith.constant 0 : i32
      %c0_i32_163 = arith.constant 0 : i32
      %384 = tpu.memref_slice %arg10[%c0_i32_162, %c0_i32_163] : memref<4x128xf32, #tpu.memory_space<vmem>> -> memref<4x128xf32, #tpu.memory_space<vmem>>
      %385 = tpu.memref_slice %arg11[%c0_i32_159] : memref<1x!tpu.dma_semaphore, #tpu.memory_space<semaphore_mem>> -> memref<1x!tpu.dma_semaphore, #tpu.memory_space<semaphore_mem>>
      %386 = tpu.memref_squeeze %385 : memref<1x!tpu.dma_semaphore, #tpu.memory_space<semaphore_mem>> -> memref<!tpu.dma_semaphore, #tpu.memory_space<semaphore_mem>>
      tpu.wait_dma2 semaphore(%386 : memref<!tpu.dma_semaphore, #tpu.memory_space<semaphore_mem>>) src(%383 : memref<4x128xf32, #tpu.memory_space<vmem>>) dst(%384 : memref<4x128xf32, #tpu.memory_space<vmem>>)
    } else {
    }
    return
  }
  func.func @transform_1(%arg0: i32, %arg1: memref<32xi32, #tpu.memory_space<smem>>, %arg2: memref<4xi32, #tpu.memory_space<smem>>) -> (i32, i32) {
    %c0_i32 = arith.constant 0 : i32
    %c0_i32_0 = arith.constant 0 : i32
    return %arg0, %c0_i32 : i32, i32
  }
  func.func @transform_2(%arg0: i32, %arg1: memref<32xi32, #tpu.memory_space<smem>>, %arg2: memref<4xi32, #tpu.memory_space<smem>>) -> (i32, i32) {
    %c0_i32 = arith.constant 0 : i32
    %c0_i32_0 = arith.constant 0 : i32
    return %arg0, %c0_i32 : i32, i32
  }
  func.func @transform_3(%arg0: i32, %arg1: memref<32xi32, #tpu.memory_space<smem>>, %arg2: memref<4xi32, #tpu.memory_space<smem>>) -> (i32, i32) {
    %c0_i32 = arith.constant 0 : i32
    %c0_i32_0 = arith.constant 0 : i32
    return %arg0, %c0_i32 : i32, i32
  }
}

</mosaic_0001>

<bundles_post_ra>
// kernel: tpu_custom_call.1
= control target key start
LH: loop header
LB: loop body
LE: loop exit
PB: predicated region body
PF: predicated region fallthrough
CT: control target
= control target key end

     0   :  { %s2430_s0 = inlined_call_operand.vmem [shape: s32[32], index: 0, kind: input, shape index: {}]   ;;  %s2431_s2 = inlined_call_operand.hbm [shape: f32[64,128], index: 2, kind: input, shape index: {}, may-alias: {2,6}]   ;;  %s2432_s3 = inlined_call_operand.vmem [shape: f32[16,32], index: 3, kind: input, shape index: {}]   ;;  %s2433_s4 = inlined_call_operand.vmem [shape: f32[4,128], index: 4, kind: input, shape index: {}]   ;;  %s2434_s5 = inlined_call_operand.hbm [shape: f32[4,768], index: 5, kind: output, shape index: {0}]   ;;  %s2435_s6 = inlined_call_operand.hbm [shape: f32[64,128], index: 6, kind: output, shape index: {1}, may-alias: {2,6}]   ;;  %s2436_s1 = inlined_call_operand.vmem [shape: s32[4], index: 1, kind: input, shape index: {}]  }
   0x1   :  { %s12_s23 = sshll.u32 %s2430_s0, 4  ;;  %s16_s26 = sshll.u32 %s2436_s1, 4  ;;  %s13_s23 = int_to_ptr.vmem [resolvable:$true] %s12_s23  ;;  %s17_s26 = int_to_ptr.vmem [resolvable:$true] %s16_s26 }
   0x2   :  { %s1969_s27 = scalar_lea.vmem %s13_s23, 16  ;;  %p1974_p1 = scmp.lt.s32.totalorder %s13_s23, %s13_s23 }
   0x3   :  { %p1970_p0 = scmp.ne.s32.totalorder %s13_s23, %s1969_s27  ;;  %p1975_p2 = scmp.lt.s32.totalorder %s1969_s27, %s1969_s27 }
   0x5   :  { %p1976_p3 = por %p1975_p2, %p1974_p1 }
   0x7   :  { %p1977_p4 = pnand %p1976_p3, %p1970_p0 }
   0x9   :  { %1980 = shalt.err (!%p1977_p4)  }
   0xa   :  { %s2087_s28 = smov [#allocation7]   ;;  %s1981_s29 = scalar_lea.vmem %s17_s26, 16 }
   0xb   :  { %15 = dma.vmem_to_smem %s13_s23, 16, %s2087_s28, [#allocation6] }
   0xc   :  { %p1982_p5 = scmp.ne.s32.totalorder %s17_s26, %s1981_s29  ;;  %p1986_p6 = scmp.lt.s32.totalorder %s17_s26, %s17_s26 }
   0xd   :  { %p1987_p7 = scmp.lt.s32.totalorder %s1981_s29, %s1981_s29 }
   0xf   :  { %p1988_p8 = por %p1987_p7, %p1986_p6 }
  0x11   :  { %p1989_p9 = pnand %p1988_p8, %p1982_p5 }
  0x13   :  { %1992 = shalt.err (!%p1989_p9)  }
  0x14   :  { %s2088_s0 = smov [#allocation8]  }
  0x15   :  { %19 = dma.vmem_to_smem %s17_s26, 16, %s2088_s0, [#allocation6] }
  0x16   :  { %2071 = dma.done.wait [#allocation6], 32 }
  0x17   :  { %2072 = vsyncadd [#allocation6], 4294967264 }
  0x18   :  { %21 = sfence }
  0x19   :  { %22 = vsyncpa [#allocation10], 0  ;;  %s2138_s1 = smov 0  }
  0x1a LB: > { %s45_s30 = sld [smem:[#allocation7 + %s2081_s1]]  ;;  %s48_s7 = scalar_lea.vmem [#allocation2], %s2081_s1  ;;  %s2081_s1 = sphi %s2138_s1, %s44_s1  }
  0x1b   : > { %s56_s8 = sshll.u32 %s48_s7, 4  ;;  %s1995_s16 = scalar_lea.hbm %s2431_s2, 1024  ;;  %s57_s8 = int_to_ptr.vmem [resolvable:$true] %s56_s8 }
  0x20   : > { %s1712_s9 = sshll.u32 %s45_s30, 4 }
  0x21   : > { %s47_s12 = scalar_lea.hbm %s2431_s2, %s1712_s9 }
  0x22   : > { %s1993_s13 = scalar_lea.hbm %s47_s12, 16  ;;  %p1996_p11 = scmp.lt.u32.totalorder %s47_s12, %s2431_s2 }
  0x23   : > { %p1994_p10 = scmp.ne.s32.totalorder %s47_s12, %s1993_s13  ;;  %p1997_p12 = scmp.lt.u32.totalorder %s1995_s16, %s1993_s13 }
  0x24   : > { %p1999_p0 = scmp.lt.u32.totalorder %s1993_s13, %s47_s12 }
  0x25   : > { %p1998_p13 = por %p1997_p12, %p1996_p11 }
  0x27   : > { %p2000_p1 = por %p1999_p0, %p1998_p13 }
  0x29   : > { %p2001_p2 = pnand %p2000_p1, %p1994_p10 }
  0x2b   : > { %2004 = shalt.err (!%p2001_p2)  }
  0x2c   : > { %s2005_s19 = scalar_lea.vmem %s57_s8, 16  ;;  %s2089_s20 = smov [#allocation2]  }
  0x2d   : > { %p2006_p3 = scmp.ne.s32.totalorder %s57_s8, %s2005_s19  ;;  %s2007_s21 = sshll.u32 %s2089_s20, 4  ;;  %s2008_s21 = int_to_ptr.vmem [resolvable:$false] %s2007_s21 }
  0x2e   : > { %s2009_s22 = scalar_lea.vmem %s2008_s21, 1024  ;;  %p2010_p4 = scmp.lt.s32.totalorder %s57_s8, %s2008_s21 }
  0x2f   : > { %p2011_p5 = scmp.lt.s32.totalorder %s2009_s22, %s2005_s19 }
  0x31   : > { %p2012_p6 = por %p2011_p5, %p2010_p4 }
  0x33   : > { %p2013_p7 = pnand %p2012_p6, %p2006_p3 }
  0x35   : > { %2016 = shalt.err (!%p2013_p7)  }
  0x36   : > { %59 = dma.hbm_to_vmem [thread:$0]  %s47_s12, 16, %s57_s8, [#allocation3] }
  0x37   : > { %s44_s1 = sadd.s32 1, %s2081_s1  }
  0x38   : > { %p41_p8 = scmp.ge.s32.totalorder %s44_s1, 32  }
  0x3a   :  { %43 = sbr.rel (!%p41_p8) target bundleno = 26 (0x1a), region = 90 }
  0x41   :  { %2073 = dma.done.wait [#allocation3], 512 }
  0x42   :  { %2074 = vsyncadd [#allocation3], 4294966784  ;;  %v2090_v0 = vmov 0.0   ;;  %vm2091_vm0 = vmmov 0   ;;  %v98_v1 = vld [vmem:[#allocation2] sm:$0xff]  ;;  %s2092_s2 = smov 32  }
  0x43   :  { %1806 = vmatprep.subr.mxu1 %v2090_v0  ;;  %1801 = vmatprep.subr.mxu0 %v2090_v0  ;;  %v435_v2 = vld [vmem:[%s2433_s4] sm:$0x1]  ;;  %v436_v4 = vmul.f32 0.5, %v98_v1  ;;  %s2093_s25 = smov 96   ;;  %vm100_vm1 = vcmask 261120   ;;  %s2094_s28 = smov 64  }
  0x44   :  { %1808 = vmatprep.mubr.msk.f32.mxu1 %vm2091_vm0, %v2090_v0  ;;  %1803 = vmatprep.mubr.msk.f32.mxu0 %vm2091_vm0, %v2090_v0  ;;  %v437_v3 = vmul.f32 0.5, %v435_v2  ;;  %v99_v6 = vld [vmem:[%s2432_s3] sm:$0xf]  ;;  %v481_v8 = vld [vmem:[#allocation2 + $0x8] sm:$0xff]  ;;  %vm440_vm2 = vcmask 253952   ;;  %v2201_v16 = vld [vmem:[#allocation2 + $0x10] sm:$0xff] }
  0x45   :  { %325 = vrot.lane.b32.xlu1 %v98_v1, %s2092_s2  ;;  %177 = vrot.lane.b32.xlu0 %v98_v1, %s2093_s25  ;;  %v816_v10 = vld [vmem:[%s2433_s4 + $0x1] sm:$0x1]  ;;  %v817_v11 = vmul.f32 0.5, %v481_v8  ;;  %v2207_v17 = vld [vmem:[#allocation2 + $0x18] sm:$0xff]  ;;  %v482_v23 = vld [vmem:[%s2432_s3 + $0x4] sm:$0xf] }
  0x46   :  { %1802 = vmatpush3.xpose.msk.msra.mxu0 %vm100_vm1, %v98_v1  ;;  %v2169_v5 = vadd.f32 %v437_v3, %v436_v4  ;;  %v818_v12 = vmul.f32 0.5, %v816_v10  ;;  %v859_v29 = vld [vmem:[%s2432_s3 + $0x8] sm:$0xf]  ;;  %v1236_v42 = vld [vmem:[%s2432_s3 + $0xc] sm:$0xf]  ;;  %vm457_vm3 = vcmask 516352  }
  0x47   :  { %1811 = vmatprep.subr.mxu0 %v2090_v0  ;;  %v1193_v51 = vld [vmem:[%s2433_s4 + $0x2] sm:$0x1]  ;;  %v1194_v52 = vmul.f32 0.5, %v2201_v16  ;;  %vm467_vm4 = vcmask 778752   ;;  %vm477_vm5 = vcmask 1041152   ;;  %vm402_vm6 = vcmask 57344  }
  0x48   :  { %v439_v7 = vmul.f32 %v2169_v5, %v2169_v5  ;;  %v2190_v13 = vadd.f32 %v818_v12, %v817_v11  ;;  %v1195_v53 = vmul.f32 0.5, %v1193_v51 }
  0x49   :  { %251 = vrot.lane.b32.xlu0 %v98_v1, %s2094_s28  ;;  %1804 = vmatmul.mubr.msk.f32.vlgmr.msra.gmra.mrb[0].mxu0 %vm100_vm1, %v99_v6 }
  0x4a   :  { %1813 = vmatprep.mubr.msk.f32.mxu0 %vm2091_vm0, %v2090_v0  ;;  %v441_v9 = vsel %vm440_vm2, %v439_v7, 0.0  ;;  %v2194_v14 = vmul.f32 %v2190_v13, %v2190_v13  ;;  %v2315_v55 = vadd.f32 %v1195_v53, %v1194_v52 }
  0x4c   :  { %v821_v15 = vsel %vm440_vm2, %v2194_v14, 0.0  ;;  %v1197_v59 = vmul.f32 %v2315_v55, %v2315_v55 }
  0x4d   :  { %449 = vrot.lane.b32.xlu0 %v439_v7, %s2093_s25 }
  0x4e   :  { %v1198_v1 = vsel %vm440_vm2, %v1197_v59, 0.0 }
  0x51   :  { %469 = vrot.lane.b32.xlu0 %v439_v7, %s2092_s2 }
  0x55   :  { %559 = vrot.lane.b32.xlu0 %v481_v8, %s2093_s25 }
  0x59   :  { %633 = vrot.lane.b32.xlu0 %v481_v8, %s2094_s28 }
  0x5d   :  { %707 = vrot.lane.b32.xlu0 %v481_v8, %s2092_s2 }
  0x69   :  { %442 = vadd.xlane.f32.xlu1 %v441_v9 }
  0x7a   :  { %459 = vrot.lane.b32.xlu1 %v439_v7, %s2094_s28 }
  0x7c   :  { %822 = vadd.xlane.f32.xlu0 %v821_v15 }
  0x7e   :  { %829 = vrot.lane.b32.xlu1 %v2194_v14, %s2093_s25 }
  0x82   :  { %936 = vrot.lane.b32.xlu1 %v2201_v16, %s2093_s25 }
  0x86   :  { %1084 = vrot.lane.b32.xlu1 %v2201_v16, %s2092_s2 }
  0x8a   :  { %1313 = vrot.lane.b32.xlu1 %v2207_v17, %s2093_s25 }
  0x8e   :  { %1387 = vrot.lane.b32.xlu1 %v2207_v17, %s2094_s28 }
  0x92   :  { %1010 = vrot.lane.b32.xlu0 %v2201_v16, %s2094_s28  ;;  %1461 = vrot.lane.b32.xlu1 %v2207_v17, %s2092_s2 }
  0xb7   :  { %v178_v18 = vpop.permute.xlu0 %177  ;;  %v326_v19 = vpop.permute.xlu1 %325 }
  0xb8   :  { %1807 = vmatpush3.xpose.msk.msra.mxu1 %vm100_vm1, %v178_v18 }
  0xb9   :  { %1816 = vmatprep.subr.mxu1 %v2090_v0 }
  0xbb   :  { %1809 = vmatmul.mubr.msk.f32.vlgmr.msra.gmra.mrb[0].mxu1 %vm100_vm1, %v99_v6  ;;  %v252_v20 = vpop.permute.xlu0 %251 }
  0xbc   :  { %1817 = vmatpush3.xpose.msk.msra.mxu1 %vm100_vm1, %v326_v19  ;;  %1812 = vmatpush3.xpose.msk.msra.mxu0 %vm100_vm1, %v252_v20  ;;  %v1570_v19 = vld [vmem:[%s2433_s4 + $0x3] sm:$0x1]  ;;  %s2399_s4 = smov 0  }
  0xbd   :  { %1818 = vmatprep.mubr.msk.f32.mxu1 %vm2091_vm0, %v2090_v0  ;;  %1826 = vmatprep.subr.mxu1 %v2090_v0 }
  0xbe   :  { %1821 = vmatprep.subr.mxu0 %v2090_v0 }
  0xbf   :  { %v450_v21 = vpop.permute.xlu0 %449  ;;  %1814 = vmatmul.mubr.msk.f32.vlgmr.msra.gmra.mrb[2].mxu0 %vm100_vm1, %v99_v6  ;;  %1819 = vmatmul.mubr.msk.f32.vlgmr.msra.gmra.mrb[2].mxu1 %vm100_vm1, %v99_v6 }
  0xc0   :  { %v452_v22 = vsel %vm440_vm2, %v450_v21, 0.0  ;;  %1822 = vmatpush3.xpose.msk.msra.mxu0 %vm100_vm1, %v481_v8  ;;  %1823 = vmatprep.mubr.msk.f32.mxu0 %vm2091_vm0, %v2090_v0  ;;  %v1571_v21 = vmul.f32 0.5, %v2207_v17 }
  0xc1   :  { %453 = vadd.xlane.f32.xlu0 %v452_v22  ;;  %1831 = vmatprep.subr.mxu0 %v2090_v0  ;;  %v1572_v22 = vmul.f32 0.5, %v1570_v19 }
  0xc2   :  { %1828 = vmatprep.mubr.msk.f32.mxu1 %vm2091_vm0, %v2090_v0 }
  0xc3   :  { %v470_v24 = vpop.permute.xlu0 %469  ;;  %1824 = vmatmul.mubr.msk.f32.vlgmr.msra.gmra.mrb[4].mxu0 %vm100_vm1, %v482_v23 }
  0xc4   :  { %v472_v25 = vsel %vm440_vm2, %v470_v24, 0.0  ;;  %1833 = vmatprep.mubr.msk.f32.mxu0 %vm2091_vm0, %v2090_v0 }
  0xc5   :  { %473 = vadd.xlane.f32.xlu1 %v472_v25 }
  0xc7   :  { %v560_v26 = vpop.permute.xlu0 %559 }
  0xc8   :  { %1827 = vmatpush3.xpose.msk.msra.mxu1 %vm100_vm1, %v560_v26 }
  0xc9   :  { %1836 = vmatprep.subr.mxu1 %v2090_v0 }
  0xcb   :  { %v634_v27 = vpop.permute.xlu0 %633  ;;  %1829 = vmatmul.mubr.msk.f32.vlgmr.msra.gmra.mrb[4].mxu1 %vm100_vm1, %v482_v23 }
  0xcc   :  { %1832 = vmatpush3.xpose.msk.msra.mxu0 %vm100_vm1, %v634_v27  ;;  %1838 = vmatprep.mubr.msk.f32.mxu1 %vm2091_vm0, %v2090_v0 }
  0xcd   :  { %1841 = vmatprep.subr.mxu0 %v2090_v0 }
  0xcf   :  { %v708_v28 = vpop.permute.xlu0 %707  ;;  %1834 = vmatmul.mubr.msk.f32.vlgmr.msra.gmra.mrb[6].mxu0 %vm100_vm1, %v482_v23 }
  0xd0   :  { %1837 = vmatpush3.xpose.msk.msra.mxu1 %vm100_vm1, %v708_v28  ;;  %1842 = vmatpush3.xpose.msk.msra.mxu0 %vm100_vm1, %v2201_v16 }
  0xd1   :  { %1846 = vmatprep.subr.mxu1 %v2090_v0  ;;  %1843 = vmatprep.mubr.msk.f32.mxu0 %vm2091_vm0, %v2090_v0 }
  0xd2   :  { %1851 = vmatprep.subr.mxu0 %v2090_v0 }
  0xd3   :  { %1839 = vmatmul.mubr.msk.f32.vlgmr.msra.gmra.mrb[6].mxu1 %vm100_vm1, %v482_v23  ;;  %1844 = vmatmul.mubr.msk.f32.vlgmr.msra.gmra.mrb[8].mxu0 %vm100_vm1, %v859_v29  ;;  %v2342_v23 = vadd.f32 %v1572_v22, %v1571_v21 }
  0xd4   :  { %1848 = vmatprep.mubr.msk.f32.mxu1 %vm2091_vm0, %v2090_v0  ;;  %1853 = vmatprep.mubr.msk.f32.mxu0 %vm2091_vm0, %v2090_v0 }
  0xf6   :  { %v443_v30 = vpop.xlane.xlu1 %442 }
  0xf7   :  { %1905 = vrsqrt.f32 %v443_v30 }
  0xfa   :  { %v460_v31 = vpop.permute.xlu1 %459 }
  0xfb   :  { %v462_v32 = vsel %vm440_vm2, %v460_v31, 0.0 }
  0xfc   :  { %463 = vadd.xlane.f32.xlu0 %v462_v32 }
  0xfe   :  { %v830_v33 = vpop.permute.xlu1 %829 }
  0xff   :  { %v832_v34 = vsel %vm440_vm2, %v830_v33, 0.0 }
 0x100   :  { %833 = vadd.xlane.f32.xlu1 %v832_v34 }
 0x101   :  { %v1906_v35 = vpop.eup %1905 }
 0x102   :  { %v445_v36 = vmul.f32 %v1906_v35, %v2169_v5  ;;  %v937_v37 = vpop.permute.xlu1 %936 }
 0x103   :  { %1847 = vmatpush3.xpose.msk.msra.mxu1 %vm100_vm1, %v937_v37 }
 0x104   :  { %447 = vst.msk [vmem:[#allocation4] sm:$0x1] %vm440_vm2, %v445_v36  ;;  %1856 = vmatprep.subr.mxu1 %v2090_v0 }
 0x106   :  { %v1085_v38 = vpop.permute.xlu1 %1084  ;;  %1849 = vmatmul.mubr.msk.f32.vlgmr.msra.gmra.mrb[8].mxu1 %vm100_vm1, %v859_v29 }
 0x107   :  { %1857 = vmatpush3.xpose.msk.msra.mxu1 %vm100_vm1, %v1085_v38  ;;  %1858 = vmatprep.mubr.msk.f32.mxu1 %vm2091_vm0, %v2090_v0 }
 0x108   :  { %1866 = vmatprep.subr.mxu1 %v2090_v0 }
 0x109   :  { %v823_v39 = vpop.xlane.xlu0 %822 }
 0x10a   :  { %1907 = vrsqrt.f32 %v823_v39  ;;  %v1314_v40 = vpop.permute.xlu1 %1313  ;;  %1859 = vmatmul.mubr.msk.f32.vlgmr.msra.gmra.mrb[10].mxu1 %vm100_vm1, %v859_v29 }
 0x10b   :  { %1867 = vmatpush3.xpose.msk.msra.mxu1 %vm100_vm1, %v1314_v40  ;;  %1868 = vmatprep.mubr.msk.f32.mxu1 %vm2091_vm0, %v2090_v0 }
 0x10c   :  { %1876 = vmatprep.subr.mxu1 %v2090_v0 }
 0x10d   :  { %v1011_v41 = vpop.permute.xlu0 %1010 }
 0x10e   :  { %1852 = vmatpush3.xpose.msk.msra.mxu0 %vm100_vm1, %v1011_v41  ;;  %v1388_v43 = vpop.permute.xlu1 %1387  ;;  %1869 = vmatmul.mubr.msk.f32.vlgmr.msra.gmra.mrb[12].mxu1 %vm100_vm1, %v1236_v42 }
 0x10f   :  { %1861 = vmatprep.subr.mxu0 %v2090_v0  ;;  %1878 = vmatprep.mubr.msk.f32.mxu1 %vm2091_vm0, %v2090_v0 }
 0x111   :  { %847 = vrot.lane.b32.xlu1 %v2194_v14, %s2092_s2  ;;  %1854 = vmatmul.mubr.msk.f32.vlgmr.msra.gmra.mrb[10].mxu0 %vm100_vm1, %v859_v29 }
 0x112   :  { %838 = vrot.lane.b32.xlu0 %v2194_v14, %s2094_s28  ;;  %1862 = vmatpush3.xpose.msk.msra.mxu0 %vm100_vm1, %v2207_v17  ;;  %v1462_v44 = vpop.permute.xlu1 %1461 }
 0x113   :  { %1863 = vmatprep.mubr.msk.f32.mxu0 %vm2091_vm0, %v2090_v0  ;;  %1871 = vmatprep.subr.mxu0 %v2090_v0 }
 0x114   :  { %v1908_v45 = vpop.eup %1907  ;;  %1877 = vmatpush3.xpose.msk.msra.mxu1 %vm100_vm1, %v1462_v44 }
 0x115   :  { %v825_v46 = vmul.f32 %v1908_v45, %v2190_v13  ;;  %1864 = vmatmul.mubr.msk.f32.vlgmr.msra.gmra.mrb[12].mxu0 %vm100_vm1, %v1236_v42 }
 0x116   :  { %1872 = vmatpush3.xpose.msk.msra.mxu0 %vm100_vm1, %v1388_v43  ;;  %1873 = vmatprep.mubr.msk.f32.mxu0 %vm2091_vm0, %v2090_v0 }
 0x117   :  { %827 = vst.msk [vmem:[#allocation4 + $0x1] sm:$0x1] %vm440_vm2, %v825_v46  ;;  %1879 = vmatmul.mubr.msk.f32.vlgmr.msra.gmra.mrb[14].mxu1 %vm100_vm1, %v1236_v42 }
 0x119   :  { %1874 = vmatmul.mubr.msk.f32.vlgmr.msra.gmra.mrb[14].mxu0 %vm100_vm1, %v1236_v42 }
 0x11c   :  { %v173_v24 = vpop.f32.mrb[0].mxu0 }
 0x11d   :  { %v404_v25 = vmul.f32 14.285714, %v173_v24  ;;  %v1805_v27 = vpop.f32.mrb[1].mxu0 }
 0x11f   :  { %v405_v31 = vmul.f32 1.442695, %v404_v25 }
 0x14e   :  { %v454_v47 = vpop.xlane.xlu0 %453 }
 0x14f   :  { %1909 = vrsqrt.f32 %v454_v47 }
 0x152   :  { %v474_v50 = vpop.xlane.xlu1 %473 }
 0x153   :  { %1911 = vrsqrt.f32 %v474_v50 }
 0x159   :  { %v1910_v48 = vpop.eup %1909 }
 0x15a   :  { %v456_v49 = vmul.f32 %v1910_v48, %v2169_v5 }
 0x15c   :  { %458 = vst.msk [vmem:[#allocation4] sm:$0x1] %vm457_vm3, %v456_v49 }
 0x15d   :  { %v1912_v60 = vpop.eup %1911 }
 0x15e   :  { %v476_v0 = vmul.f32 %v1912_v60, %v2169_v5 }
 0x189   :  { %v464_v54 = vpop.xlane.xlu0 %463 }
 0x18a   :  { %1913 = vrsqrt.f32 %v464_v54 }
 0x18d   :  { %v839_v56 = vpop.permute.xlu0 %838  ;;  %v834_v57 = vpop.xlane.xlu1 %833 }
 0x18e   :  { %1915 = vrsqrt.f32 %v834_v57  ;;  %v841_v58 = vsel %vm440_vm2, %v839_v56, 0.0  ;;  %v247_v17 = vpop.f32.mrb[0].mxu1 }
 0x18f   :  { %842 = vadd.xlane.f32.xlu0 %v841_v58  ;;  %v412_v26 = vmul.f32 14.285714, %v247_v17  ;;  %v1810_v28 = vpop.f32.mrb[1].mxu1 }
 0x191   :  { %v848_v61 = vpop.permute.xlu1 %847  ;;  %v413_v32 = vmul.f32 1.442695, %v412_v26 }
 0x192   :  { %v850_v62 = vsel %vm440_vm2, %v848_v61, 0.0  ;;  %v321_v29 = vpop.f32.mrb[2].mxu0  ;;  %v395_v30 = vpop.f32.mrb[2].mxu1 }
 0x193   :  { %851 = vadd.xlane.f32.xlu0 %v850_v62  ;;  %v399_v33 = vmul.f32 14.285714, %v321_v29  ;;  %v420_v34 = vmul.f32 14.285714, %v395_v30  ;;  %v1815_v35 = vpop.f32.mrb[3].mxu0  ;;  %v1820_v36 = vpop.f32.mrb[3].mxu1 }
 0x194   :  { %v1914_v63 = vpop.eup %1913 }
 0x195   :  { %v466_v2 = vmul.f32 %v1914_v63, %v2169_v5  ;;  %v400_v37 = vmul.f32 1.442695, %v399_v33  ;;  %v421_v40 = vmul.f32 1.442695, %v420_v34 }
 0x196   :  { %v555_v38 = vpop.f32.mrb[4].mxu0 }
 0x197   :  { %468 = vst.msk [vmem:[#allocation4] sm:$0x1] %vm467_vm4, %v466_v2  ;;  %1199 = vadd.xlane.f32.xlu0 %v1198_v1  ;;  %v785_v41 = vmul.f32 14.285714, %v555_v38  ;;  %v1825_v43 = vpop.f32.mrb[5].mxu0 }
 0x198   :  { %v1916_v3 = vpop.eup %1915  ;;  %478 = vst.msk [vmem:[#allocation4] sm:$0x1] %vm477_vm5, %v476_v0 }
 0x199   :  { %v836_v4 = vmul.f32 %v1916_v3, %v2190_v13  ;;  %v786_v45 = vmul.f32 1.442695, %v785_v41 }
 0x19b   :  { %837 = vst.msk [vmem:[#allocation4 + $0x1] sm:$0x1] %vm457_vm3, %v836_v4 }
 0x19e   :  { %v629_v39 = vpop.f32.mrb[4].mxu1 }
 0x19f   :  { %v793_v42 = vmul.f32 14.285714, %v629_v39  ;;  %v1830_v44 = vpop.f32.mrb[5].mxu1 }
 0x1a1   :  { %v794_v46 = vmul.f32 1.442695, %v793_v42 }
 0x1a2   :  { %v703_v47 = vpop.f32.mrb[6].mxu0 }
 0x1a3   :  { %v781_v49 = vmul.f32 14.285714, %v703_v47  ;;  %v1835_v51 = vpop.f32.mrb[7].mxu0 }
 0x1a5   :  { %v782_v56 = vmul.f32 1.442695, %v781_v49 }
 0x1a6   :  { %v777_v48 = vpop.f32.mrb[6].mxu1  ;;  %v932_v53 = vpop.f32.mrb[8].mxu0 }
 0x1a7   :  { %v801_v50 = vmul.f32 14.285714, %v777_v48  ;;  %v1840_v52 = vpop.f32.mrb[7].mxu1  ;;  %v1162_v58 = vmul.f32 14.285714, %v932_v53  ;;  %v1845_v60 = vpop.f32.mrb[9].mxu0 }
 0x1a9   :  { %v802_v57 = vmul.f32 1.442695, %v801_v50  ;;  %v1163_v62 = vmul.f32 1.442695, %v1162_v58 }
 0x1ad   :  { %1206 = vrot.lane.b32.xlu0 %v1197_v59, %s2093_s25 }
 0x1b1   :  { %1215 = vrot.lane.b32.xlu0 %v1197_v59, %s2094_s28 }
 0x1d9   :  { %v1006_v54 = vpop.f32.mrb[8].mxu1 }
 0x1da   :  { %v1850_v61 = vpop.f32.mrb[9].mxu1 }
 0x1dd   :  { %v1154_v0 = vpop.f32.mrb[10].mxu1 }
 0x1de   :  { %v1178_v3 = vmul.f32 14.285714, %v1154_v0 }
 0x1e4   :  { %v1080_v63 = vpop.f32.mrb[10].mxu0 }
 0x1e5   :  { %v1158_v2 = vmul.f32 14.285714, %v1080_v63 }
 0x21c   :  { %v843_v6 = vpop.xlane.xlu0 %842 }
 0x21d   :  { %1917 = vrsqrt.f32 %v843_v6  ;;  %v1855_v6 = vpop.f32.mrb[11].mxu0 }
 0x220   :  { %v852_v7 = vpop.xlane.xlu0 %851 }
 0x221   :  { %1919 = vrsqrt.f32 %v852_v7  ;;  %v1860_v7 = vpop.f32.mrb[11].mxu1 }
 0x224   :  { %v1200_v5 = vpop.xlane.xlu0 %1199 }
 0x225   :  { %1921 = vrsqrt.f32 %v1200_v5 }
 0x226   :  { %1923 = vpow2.f32 %v405_v31 }
 0x227   :  { %v1918_v8 = vpop.eup %1917  ;;  %1925 = vpow2.f32 %v413_v32 }
 0x228   :  { %v845_v9 = vmul.f32 %v1918_v8, %v2190_v13  ;;  %v1207_v10 = vpop.permute.xlu0 %1206  ;;  %1927 = vpow2.f32 %v400_v37 }
 0x229   :  { %v1209_v11 = vsel %vm440_vm2, %v1207_v10, 0.0  ;;  %1929 = vpow2.f32 %v421_v40  ;;  %v1179_v10 = vmul.f32 1.442695, %v1178_v3 }
 0x22a   :  { %846 = vst.msk [vmem:[#allocation4 + $0x1] sm:$0x1] %vm467_vm4, %v845_v9  ;;  %1210 = vadd.xlane.f32.xlu1 %v1209_v11  ;;  %1931 = vpow2.f32 %v786_v45  ;;  %v1159_v9 = vmul.f32 1.442695, %v1158_v2  ;;  %v1383_v11 = vpop.f32.mrb[12].mxu1 }
 0x22b   :  { %v1920_v12 = vpop.eup %1919  ;;  %1933 = vpow2.f32 %v794_v46 }
 0x22c   :  { %v854_v14 = vmul.f32 %v1920_v12, %v2190_v13  ;;  %v1216_v15 = vpop.permute.xlu0 %1215  ;;  %v2347_v13 = vmul.f32 %v2342_v23, %v2342_v23  ;;  %1935 = vpow2.f32 %v782_v56 }
 0x22d   :  { %v1218_v16 = vsel %vm440_vm2, %v1216_v15, 0.0  ;;  %1937 = vpow2.f32 %v802_v57  ;;  %v1547_v15 = vmul.f32 14.285714, %v1383_v11 }
 0x22e   :  { %855 = vst.msk [vmem:[#allocation4 + $0x1] sm:$0x1] %vm477_vm5, %v854_v14  ;;  %1219 = vadd.xlane.f32.xlu0 %v1218_v16  ;;  %1939 = vpow2.f32 %v1163_v62  ;;  %v1870_v16 = vpop.f32.mrb[13].mxu1  ;;  %v1575_v27 = vsel %vm440_vm2, %v2347_v13, 0.0 }
 0x22f   :  { %v1922_v18 = vpop.eup %1921  ;;  %v1548_v21 = vmul.f32 1.442695, %v1547_v15 }
 0x230   :  { %v1202_v20 = vmul.f32 %v1922_v18, %v2315_v55  ;;  %v1924_v4 = vpop.eup %1923 }
 0x231   :  { %v1926_v5 = vpop.eup %1925  ;;  %v1723_v8 = vrot.slane %v1924_v4, 9 }
 0x232   :  { %1204 = vst.msk [vmem:[#allocation4 + $0x2] sm:$0x1] %vm440_vm2, %v1202_v20  ;;  %v1928_v12 = vpop.eup %1927  ;;  %v1724_v14 = vrot.slane %v1926_v5, 10 }
 0x233   :  { %v1930_v18 = vpop.eup %1929  ;;  %411 = vst.msk [vmem:[#allocation9 + $0x4] sm:$0x1] %vm402_vm6, %v1723_v8  ;;  %403 = vst.msk [vmem:[#allocation9] sm:$0x1] %vm402_vm6, %v1928_v12  ;;  %v1726_v19 = vrot.slane %v1928_v12, 11 }
 0x234   :  { %419 = vst.msk [vmem:[#allocation9 + $0x8] sm:$0x1] %vm402_vm6, %v1724_v14  ;;  %v1725_v20 = vrot.slane %v1930_v18, 9  ;;  %428 = vst.msk [vmem:[#allocation9 + $0x10] sm:$0x1] %vm402_vm6, %v1930_v18  ;;  %v1932_v22 = vpop.eup %1931 }
 0x235   :  { %433 = vst.msk [vmem:[#allocation9 + $0x14] sm:$0x1] %vm402_vm6, %v1726_v19  ;;  %v1934_v24 = vpop.eup %1933  ;;  %v1735_v17 = vrot.slane %v1932_v22, 9 }
 0x236   :  { %427 = vst.msk [vmem:[#allocation9 + $0xc] sm:$0x1] %vm402_vm6, %v1725_v20  ;;  %v1736_v25 = vrot.slane %v1934_v24, 10  ;;  %v1936_v26 = vpop.eup %1935 }
 0x237   :  { %792 = vst.msk [vmem:[#allocation9 + $0x5] sm:$0x1] %vm402_vm6, %v1735_v17  ;;  %v1938_v28 = vpop.eup %1937  ;;  %784 = vst.msk [vmem:[#allocation9 + $0x1] sm:$0x1] %vm402_vm6, %v1936_v26  ;;  %v1738_v29 = vrot.slane %v1936_v26, 11 }
 0x238   :  { %800 = vst.msk [vmem:[#allocation9 + $0x9] sm:$0x1] %vm402_vm6, %v1736_v25  ;;  %v1940_v30 = vpop.eup %1939  ;;  %v1737_v31 = vrot.slane %v1938_v28, 9  ;;  %809 = vst.msk [vmem:[#allocation9 + $0x11] sm:$0x1] %vm402_vm6, %v1938_v28 }
 0x239   :  { %814 = vst.msk [vmem:[#allocation9 + $0x15] sm:$0x1] %vm402_vm6, %v1738_v29  ;;  %v1747_v33 = vrot.slane %v1940_v30, 9 }
 0x23a   :  { %808 = vst.msk [vmem:[#allocation9 + $0xd] sm:$0x1] %vm402_vm6, %v1737_v31 }
 0x23b   :  { %1224 = vrot.lane.b32.xlu1 %v1197_v59, %s2092_s2  ;;  %v1170_v59 = vmul.f32 14.285714, %v1006_v54  ;;  %1169 = vst.msk [vmem:[#allocation9 + $0x6] sm:$0x1] %vm402_vm6, %v1747_v33  ;;  %v1309_v54 = vpop.f32.mrb[12].mxu0 }
 0x23c   :  { %v1865_v56 = vpop.f32.mrb[13].mxu0  ;;  %v1539_v57 = vmul.f32 14.285714, %v1309_v54 }
 0x23d   :  { %v1171_v1 = vmul.f32 1.442695, %v1170_v59  ;;  %v1531_v59 = vpop.f32.mrb[14].mxu1  ;;  %v1457_v60 = vpop.f32.mrb[14].mxu0 }
 0x23e   :  { %v1540_v58 = vmul.f32 1.442695, %v1539_v57  ;;  %v1875_v61 = vpop.f32.mrb[15].mxu0  ;;  %v1880_v62 = vpop.f32.mrb[15].mxu1  ;;  %v1555_v63 = vmul.f32 14.285714, %v1531_v59 }
 0x23f   :  { %1592 = vrot.lane.b32.xlu1 %v2347_v13, %s2094_s28  ;;  %1941 = vpow2.f32 %v1171_v1  ;;  %v1535_v0 = vmul.f32 14.285714, %v1457_v60 }
 0x240   :  { %1943 = vpow2.f32 %v1159_v9  ;;  %v1556_v1 = vmul.f32 1.442695, %v1555_v63 }
 0x241   :  { %1945 = vpow2.f32 %v1179_v10  ;;  %v1536_v2 = vmul.f32 1.442695, %v1535_v0 }
 0x242   :  { %1947 = vpow2.f32 %v1548_v21 }
 0x243   :  { %1601 = vrot.lane.b32.xlu1 %v2347_v13, %s2092_s2 }
 0x244   :  { %1583 = vrot.lane.b32.xlu0 %v2347_v13, %s2093_s25 }
 0x249   :  { %v1942_v32 = vpop.eup %1941 }
 0x24a   :  { %v1748_v13 = vrot.slane %v1942_v32, 10  ;;  %v1944_v34 = vpop.eup %1943 }
 0x24b   :  { %v1946_v35 = vpop.eup %1945  ;;  %1161 = vst.msk [vmem:[#allocation9 + $0x2] sm:$0x1] %vm402_vm6, %v1944_v34  ;;  %v1750_v36 = vrot.slane %v1944_v34, 11 }
 0x24c   :  { %1177 = vst.msk [vmem:[#allocation9 + $0xa] sm:$0x1] %vm402_vm6, %v1748_v13  ;;  %v1749_v37 = vrot.slane %v1946_v35, 9  ;;  %1186 = vst.msk [vmem:[#allocation9 + $0x12] sm:$0x1] %vm402_vm6, %v1946_v35  ;;  %v1948_v38 = vpop.eup %1947 }
 0x24d   :  { %1191 = vst.msk [vmem:[#allocation9 + $0x16] sm:$0x1] %vm402_vm6, %v1750_v36  ;;  %v1760_v39 = vrot.slane %v1948_v38, 10 }
 0x24e   :  { %1185 = vst.msk [vmem:[#allocation9 + $0xe] sm:$0x1] %vm402_vm6, %v1749_v37 }
 0x24f   :  { %1554 = vst.msk [vmem:[#allocation9 + $0xb] sm:$0x1] %vm402_vm6, %v1760_v39 }
 0x263   :  { %1576 = vadd.xlane.f32.xlu0 %v1575_v27 }
 0x2b7   :  { %v1211_v40 = vpop.xlane.xlu1 %1210 }
 0x2b8   :  { %1949 = vrsqrt.f32 %v1211_v40 }
 0x2bb   :  { %v1225_v41 = vpop.permute.xlu1 %1224  ;;  %v1220_v42 = vpop.xlane.xlu0 %1219 }
 0x2bc   :  { %1951 = vrsqrt.f32 %v1220_v42  ;;  %v1227_v43 = vsel %vm440_vm2, %v1225_v41, 0.0 }
 0x2bd   :  { %1228 = vadd.xlane.f32.xlu1 %v1227_v43  ;;  %1953 = vpow2.f32 %v1540_v58 }
 0x2be   :  { %1955 = vpow2.f32 %v1556_v1 }
 0x2bf   :  { %v1584_v44 = vpop.permute.xlu0 %1583  ;;  %v1593_v45 = vpop.permute.xlu1 %1592  ;;  %1957 = vpow2.f32 %v1536_v2 }
 0x2c0   :  { %v1586_v46 = vsel %vm440_vm2, %v1584_v44, 0.0  ;;  %v1595_v50 = vsel %vm440_vm2, %v1593_v45, 0.0 }
 0x2c1   :  { %1587 = vadd.xlane.f32.xlu1 %v1586_v46 }
 0x2c2   :  { %v1950_v47 = vpop.eup %1949 }
 0x2c3   :  { %v1213_v48 = vmul.f32 %v1950_v47, %v2315_v55  ;;  %v1602_v49 = vpop.permute.xlu1 %1601 }
 0x2c4   :  { %v1604_v51 = vsel %vm440_vm2, %v1602_v49, 0.0 }
 0x2c5   :  { %1214 = vst.msk [vmem:[#allocation4 + $0x2] sm:$0x1] %vm457_vm3, %v1213_v48  ;;  %1596 = vadd.xlane.f32.xlu1 %v1595_v50  ;;  %1605 = vadd.xlane.f32.xlu0 %v1604_v51 }
 0x2c6   :  { %v1952_v52 = vpop.eup %1951 }
 0x2c7   :  { %v1222_v53 = vmul.f32 %v1952_v52, %v2315_v55  ;;  %v1954_v3 = vpop.eup %1953 }
 0x2c8   :  { %v1759_v4 = vrot.slane %v1954_v3, 9  ;;  %v1956_v6 = vpop.eup %1955 }
 0x2c9   :  { %1223 = vst.msk [vmem:[#allocation4 + $0x2] sm:$0x1] %vm467_vm4, %v1222_v53  ;;  %v1958_v7 = vpop.eup %1957  ;;  %v1761_v5 = vrot.slane %v1956_v6, 9 }
 0x2ca   :  { %1546 = vst.msk [vmem:[#allocation9 + $0x7] sm:$0x1] %vm402_vm6, %v1759_v4  ;;  %1563 = vst.msk [vmem:[#allocation9 + $0x13] sm:$0x1] %vm402_vm6, %v1956_v6  ;;  %v1762_v8 = vrot.slane %v1958_v7, 11 }
 0x2cb   :  { %1538 = vst.msk [vmem:[#allocation9 + $0x3] sm:$0x1] %vm402_vm6, %v1958_v7  ;;  %1562 = vst.msk [vmem:[#allocation9 + $0xf] sm:$0x1] %vm402_vm6, %v1761_v5 }
 0x2cc   :  { %1568 = vst.msk [vmem:[#allocation9 + $0x17] sm:$0x1] %vm402_vm6, %v1762_v8 }
 0x2f0   :  { %v1577_v9 = vpop.xlane.xlu0 %1576 }
 0x2f1   :  { %1959 = vrsqrt.f32 %v1577_v9 }
 0x2fb   :  { %v1960_v10 = vpop.eup %1959 }
 0x2fc   :  { %v1579_v11 = vmul.f32 %v1960_v10, %v2342_v23 }
 0x2fe   :  { %1581 = vst.msk [vmem:[#allocation4 + $0x3] sm:$0x1] %vm440_vm2, %v1579_v11 }
 0x34a   :  { %v1229_v12 = vpop.xlane.xlu1 %1228 }
 0x34b   :  { %1961 = vrsqrt.f32 %v1229_v12 }
 0x34e   :  { %v1588_v14 = vpop.xlane.xlu1 %1587 }
 0x34f   :  { %1963 = vrsqrt.f32 %v1588_v14 }
 0x352   :  { %v1597_v15 = vpop.xlane.xlu1 %1596  ;;  %v1606_v16 = vpop.xlane.xlu0 %1605 }
 0x353   :  { %1965 = vrsqrt.f32 %v1597_v15 }
 0x354   :  { %1967 = vrsqrt.f32 %v1606_v16 }
 0x355   :  { %v1962_v18 = vpop.eup %1961 }
 0x356   :  { %v1231_v19 = vmul.f32 %v1962_v18, %v2315_v55 }
 0x358   :  { %1232 = vst.msk [vmem:[#allocation4 + $0x2] sm:$0x1] %vm477_vm5, %v1231_v19 }
 0x359   :  { %v1964_v20 = vpop.eup %1963 }
 0x35a   :  { %v1590_v21 = vmul.f32 %v1964_v20, %v2342_v23 }
 0x35c   :  { %1591 = vst.msk [vmem:[#allocation4 + $0x3] sm:$0x1] %vm457_vm3, %v1590_v21 }
 0x35d   :  { %v1966_v22 = vpop.eup %1965 }
 0x35e   :  { %v1968_v24 = vpop.eup %1967  ;;  %v1599_v17 = vmul.f32 %v1966_v22, %v2342_v23 }
 0x35f   :  { %v1608_v25 = vmul.f32 %v1968_v24, %v2342_v23 }
 0x360   :  { %1600 = vst.msk [vmem:[#allocation4 + $0x3] sm:$0x1] %vm467_vm4, %v1599_v17 }
 0x361   :  { %1609 = vst.msk [vmem:[#allocation4 + $0x3] sm:$0x1] %vm477_vm5, %v1608_v25 }
 0x362 LB: > { %s1619_s14 = sld [smem:[#allocation8 + %s2085_s4]]  ;;  %s1620_s15 = scalar_lea.vmem [#allocation4], %s2085_s4  ;;  %s2085_s4 = sphi %s2399_s4, %s1618_s4  }
 0x363   : > { %s1630_s16 = sshll.u32 %s1620_s15, 4  ;;  %s2095_s22 = smov [#allocation4]   ;;  %s1631_s16 = int_to_ptr.vmem [resolvable:$true] %s1630_s16 }
 0x364   : > { %s2017_s21 = scalar_lea.vmem %s1631_s16, 16  ;;  %s2019_s23 = sshll.u32 %s2095_s22, 4  ;;  %s2020_s23 = int_to_ptr.vmem [resolvable:$false] %s2019_s23 }
 0x365   : > { %p2018_p9 = scmp.ne.s32.totalorder %s1631_s16, %s2017_s21  ;;  %s2021_s24 = scalar_lea.vmem %s2020_s23, 64 }
 0x366   : > { %p2022_p10 = scmp.lt.s32.totalorder %s1631_s16, %s2020_s23  ;;  %p2023_p11 = scmp.lt.s32.totalorder %s2021_s24, %s2017_s21 }
 0x368   : > { %s1763_s17 = sshll.u32 %s1619_s14, 4  ;;  %p2024_p12 = por %p2023_p11, %p2022_p10 }
 0x369   : > { %s1622_s20 = scalar_lea.hbm %s2435_s6, %s1763_s17 }
 0x36a   : > { %p2025_p13 = pnand %p2024_p12, %p2018_p9 }
 0x36c   : > { %2028 = shalt.err (!%p2025_p13)  }
 0x36d   : > { %s2029_s2 = scalar_lea.hbm %s1622_s20, 16  ;;  %s2031_s27 = scalar_lea.hbm %s2435_s6, 1024 }
 0x36e   : > { %p2030_p0 = scmp.ne.s32.totalorder %s1622_s20, %s2029_s2  ;;  %p2032_p1 = scmp.lt.u32.totalorder %s1622_s20, %s2435_s6 }
 0x36f   : > { %p2033_p2 = scmp.lt.u32.totalorder %s2031_s27, %s2029_s2  ;;  %p2035_p4 = scmp.lt.u32.totalorder %s2029_s2, %s1622_s20 }
 0x371   : > { %p2034_p3 = por %p2033_p2, %p2032_p1 }
 0x373   : > { %p2036_p5 = por %p2035_p4, %p2034_p3 }
 0x375   : > { %p2037_p6 = pnand %p2036_p5, %p2030_p0 }
 0x377   : > { %2040 = shalt.err (!%p2037_p6)  }
 0x378   : > { %1633 = dma.vmem_to_hbm [thread:$0]  %s1631_s16, 16, %s1622_s20, [#allocation5] }
 0x379   : > { %s1618_s4 = sadd.s32 1, %s2085_s4  }
 0x37a   : > { %p1615_p7 = scmp.ge.s32.totalorder %s1618_s4, 4  }
 0x37c   :  { %1617 = sbr.rel (!%p1615_p7) target bundleno = 866 (0x362), region = 112 }
 0x383   :  { %2075 = dma.done.wait [#allocation5], 64 }
 0x384   :  { %2076 = vsyncadd [#allocation5], 4294967232  ;;  %s2096_s0 = smov [#allocation9]  }
 0x385   :  { %s1643_s1 = sshll.u32 %s2096_s0, 4  ;;  %s1644_s1 = int_to_ptr.vmem [resolvable:$true] %s1643_s1 }
 0x386   :  { %s2041_s30 = scalar_lea.vmem %s1644_s1, 384  ;;  %p2046_p9 = scmp.lt.s32.totalorder %s1644_s1, %s1644_s1 }
 0x387   :  { %p2042_p8 = scmp.ne.s32.totalorder %s1644_s1, %s2041_s30  ;;  %p2047_p10 = scmp.lt.s32.totalorder %s2041_s30, %s2041_s30 }
 0x389   :  { %p2048_p11 = por %p2047_p10, %p2046_p9 }
 0x38b   :  { %p2049_p12 = pnand %p2048_p11, %p2042_p8 }
 0x38d   :  { %2052 = shalt.err (!%p2049_p12)
}
 0x38e   :  { %s2053_s9 = scalar_lea.hbm %s2434_s5, 384 }
 0x38f   :  { %p2054_p13 = scmp.ne.s32.totalorder %s2434_s5, %s2053_s9  ;;  %p2057_p0 = scmp.lt.u32.totalorder %s2053_s9, %s2434_s5 }
 0x391   :  { %p2059_p1 = pnand %p2057_p0, %p2054_p13 }
 0x393   :  { %2062 = shalt.err (!%p2059_p1)
}
 0x394   :  { %1646 = dma.vmem_to_hbm [thread:$0]  %s1644_s1, 384, %s2434_s5, [#allocation10]  }
 0x395   :  { %2077 = dma.done.wait [#allocation10], 384  }
 0x396   :  { %2078 = vsyncadd [#allocation10], 4294966912 }
 0x397   :  { %1650 = vsyncpa [#allocation10], 1 }
 0x398   :  { %1651 = vsyncmov [#allocation3] }
 0x39b   :  { %s1652_s4 = vpop.sfrf %1651 }
 0x39c   :  { %p1764_p2 = scmp.ne.s32.totalorder %s1652_s4, 0 }
 0x39e   :  { %1656 = shalt.err (%p1764_p2)  }
 0x39f   :  { %1658 = vsyncmov [#allocation3 + $0x1] }
 0x3a2   :  { %s1659_s14 = vpop.sfrf %1658 }
 0x3a3   :  { %p1765_p3 = scmp.ne.s32.totalorder %s1659_s14, 0 }
 0x3a5   :  { %1663 = shalt.err (%p1765_p3)  }
 0x3a6   :  { %1664 = vsyncmov [#allocation5] }
 0x3a9   :  { %s1665_s15 = vpop.sfrf %1664 }
 0x3aa   :  { %p1766_p4 = scmp.ne.s32.totalorder %s1665_s15, 0 }
 0x3ac   :  { %1669 = shalt.err (%p1766_p4)  }

</bundles_post_ra>
